<compile_context>
chip_gen: v7x
topology: tpu7x:2x2x1
jax: 0.10.0
libtpu: 0.0.40
codegen_flags: <defaults>
</compile_context>

<pallas_src>
import jax
import jax.numpy as jnp
from jax.experimental import pallas as pl
from jax.experimental.pallas import tpu as pltpu

# ----------------------------- configuration --------------------------------
CFG = dict(
    n_items=12, n_users=8, feature_dim=6,      # encoder input split sizes
    layers=[16],                               # layers[0] even -> embedding_dim = 8
    encoder_dim=16,
    attention_dim=16,
    embed_dim=8,
    decoder_dim=16,
    vocab_size=20,
    dropout=0.5,                               # TODO(synk): dropout treated as identity (eval mode)
)

F32 = jnp.float32
SUBLANE = 8
LANE = 128


def _round_up(x, m):
    return ((x + m - 1) // m) * m


# ------------------------------ fused Pallas kernel --------------------------
def fused_forward_kernel(
        users_ref, items_ref, feats_ref, perm_ref, dl_ref, caps_ref, embtab_ref,
        wu_ref, bu_ref, wi_ref, bi_ref, wf_ref, bf_ref,
        wou_ref, woi_ref, wof_ref, bo_ref,
        wih_ref, bih_ref, wic_ref, bic_ref,
        wfb_ref, bfb_ref,
        we_ref, wa_ref, wh_ref, bl_ref,
        wfc_ref, bfc_ref,
        preds_ref,
        enc_sc, h_sc, c_sc):
    t = pl.program_id(0)

    # ---- t == 0: encoder + row sort + init_h / init_c, kept in VMEM scratch ----
    @pl.when(t == 0)
    def _():
        ue = jnp.dot(users_ref[...], wu_ref[...], preferred_element_type=F32) + bu_ref[...]
        ie = jnp.dot(items_ref[...], wi_ref[...], preferred_element_type=F32) + bi_ref[...]
        fe = jnp.dot(feats_ref[...], wf_ref[...], preferred_element_type=F32) + bf_ref[...]
        # linear_out over cat([user, item, feat]) folded into 3 column-split matmuls
        enc = (jnp.dot(ue, wou_ref[...], preferred_element_type=F32)
               + jnp.dot(ie, woi_ref[...], preferred_element_type=F32)
               + jnp.dot(fe, wof_ref[...], preferred_element_type=F32)
               + bo_ref[...])
        # sort rows by descending caption length (permutation matmul, exact)
        enc_s = jnp.dot(perm_ref[...], enc, preferred_element_type=F32)
        enc_sc[...] = enc_s
        # mean over num_pixels == 1 is the identity
        h_sc[...] = jnp.dot(enc_s, wih_ref[...], preferred_element_type=F32) + bih_ref[...]
        c_sc[...] = jnp.dot(enc_s, wic_ref[...], preferred_element_type=F32) + bic_ref[...]

    enc = enc_sc[...]            # (B_pad, D_enc)
    h = h_sc[...]                # (B_pad, H)
    c = c_sc[...]                # (B_pad, H)

    # ---- attention: with num_pixels == 1 the softmax over a size-1 axis is
    #      identically 1.0, so alpha == 1 and the attention-weighted encoding
    #      equals encoder_out (attention linears are dead compute, omitted).
    gate = jax.nn.sigmoid(jnp.dot(h, wfb_ref[...], preferred_element_type=F32)
                          + bfb_ref[...])                                   # (B_pad, D_enc)
    awe = gate * enc

    # ---- caption embedding lookup, in-kernel via one-hot matmul vs VMEM table
    tok = caps_ref[...][0]                                                  # (B_pad, 1) int32
    Bp = tok.shape[0]
    V = embtab_ref.shape[0]
    one_hot = (tok == jax.lax.broadcasted_iota(jnp.int32, (Bp, V), 1)).astype(F32)
    emb = jnp.dot(one_hot, embtab_ref[...], preferred_element_type=F32)     # (B_pad, E)

    # ---- LSTMCell on cat([emb, awe]): 3 wide matmuls into (B_pad, 4H) gates ----
    gates = (jnp.dot(emb, we_ref[...], preferred_element_type=F32)
             + jnp.dot(awe, wa_ref[...], preferred_element_type=F32)
             + jnp.dot(h, wh_ref[...], preferred_element_type=F32)
             + bl_ref[...])
    Hd = h.shape[1]
    i_g = jax.nn.sigmoid(gates[:, 0 * Hd:1 * Hd])
    f_g = jax.nn.sigmoid(gates[:, 1 * Hd:2 * Hd])
    g_g = jnp.tanh(gates[:, 2 * Hd:3 * Hd])
    o_g = jax.nn.sigmoid(gates[:, 3 * Hd:4 * Hd])
    c_new = f_g * c + i_g * g_g
    h_new = o_g * jnp.tanh(c_new)
    h_sc[...] = h_new
    c_sc[...] = c_new

    # ---- vocab projection (dropout == identity at inference); weight is lane-
    #      padded to 128 so the output store is a full, unmasked (8,128) block.
    preds = jnp.dot(h_new, wfc_ref[...], preferred_element_type=F32) + bfc_ref[...]
    mask = (dl_ref[...] > t).astype(F32)                                    # (B_pad, 1)
    preds_ref[...] = (preds * mask)[None]                                   # (1, B_pad, 128)


# --------------------------- pallas_call wrapper ------------------------------
def run_fused(users, items, feats, perm, dl, caps_in, kp,
              T_static, B_pad, V_pad, cfg):
    def cspec(a):
        nd = a.ndim
        return pl.BlockSpec(a.shape, lambda t, _nd=nd: (0,) * _nd)   # weight resident

    args = [users, items, feats, perm, dl]
    specs = [cspec(a) for a in args]

    # per-timestep caption tokens (pipelined (1, B_pad, 1) blocks)
    args.append(caps_in)
    specs.append(pl.BlockSpec((1, B_pad, 1), lambda t: (t, 0, 0)))

    weight_names = ['emb_table',
                    'enc_wu', 'enc_bu', 'enc_wi', 'enc_bi', 'enc_wf', 'enc_bf',
                    'enc_wo_u', 'enc_wo_i', 'enc_wo_f', 'enc_bo',
                    'init_h_w', 'init_h_b', 'init_c_w', 'init_c_b',
                    'fbeta_w', 'fbeta_b',
                    'lstm_we', 'lstm_wa', 'lstm_wh', 'lstm_b',
                    'fc_w', 'fc_b']
    for name in weight_names:
        a = kp[name]
        args.append(a)
        specs.append(cspec(a))

    return pl.pallas_call(
        fused_forward_kernel,
        out_shape=jax.ShapeDtypeStruct((T_static, B_pad, V_pad), F32),
        grid=(T_static,),
        in_specs=specs,
        out_specs=pl.BlockSpec((1, B_pad, V_pad), lambda t: (t, 0, 0)),
        scratch_shapes=[pltpu.VMEM((B_pad, cfg['encoder_dim']), F32),   # enc (sorted)
                        pltpu.VMEM((B_pad, cfg['decoder_dim']), F32),   # h
                        pltpu.VMEM((B_pad, cfg['decoder_dim']), F32)],  # c
        compiler_params=pltpu.CompilerParams(
            dimension_semantics=("arbitrary",)),       # recurrent axis: sequential
    )(*args)


# ------------------------------ parameter setup ------------------------------
def make_params(cfg, key):
    """Deterministic parameters with the same shapes as the PyTorch __init__."""
    Ee = cfg['layers'][0] // 2
    De, A = cfg['encoder_dim'], cfg['attention_dim']
    E, H, V = cfg['embed_dim'], cfg['decoder_dim'], cfg['vocab_size']
    ni, nu, fd = cfg['n_items'], cfg['n_users'], cfg['feature_dim']

    keys = iter(jax.random.split(key, 32))

    def w(shape, scale=0.1):
        return scale * jax.random.normal(next(keys), shape, dtype=F32)

    p = {
        # Encoder
        'user_emb_w': w((Ee, nu)), 'user_emb_b': w((Ee,)),
        'item_emb_w': w((Ee, ni)), 'item_emb_b': w((Ee,)),
        'feat_emb_w': w((2 * Ee, fd)), 'feat_emb_b': w((2 * Ee,)),
        'enc_out_w': w((De, 4 * Ee)), 'enc_out_b': w((De,)),
        # Attention (dead compute for num_pixels == 1, kept for shape fidelity)
        'att_enc_w': w((A, De)), 'att_enc_b': w((A,)),
        'att_dec_w': w((A, H)), 'att_dec_b': w((A,)),
        'att_full_w': w((1, A)), 'att_full_b': w((1,)),
        # Decoder
        'emb_table': jax.random.uniform(next(keys), (V, E), dtype=F32,
                                        minval=-0.1, maxval=0.1),
        'lstm_w_ih': w((4 * H, E + De)), 'lstm_w_hh': w((4 * H, H)),
        'lstm_b_ih': w((4 * H,)), 'lstm_b_hh': w((4 * H,)),
        'init_h_w': w((H, De)), 'init_h_b': w((H,)),
        'init_c_w': w((H, De)), 'init_c_b': w((H,)),
        'fbeta_w': w((De, H)), 'fbeta_b': w((De,)),
        'fc_w': jax.random.uniform(next(keys), (V, H), dtype=F32,
                                   minval=-0.1, maxval=0.1),
        'fc_b': jnp.zeros((V,), F32),
    }
    return p


def prepare_kernel_params(p, cfg):
    """Glue: transpose / split / pad PyTorch-shaped params for the fused kernel."""
    Ee = cfg['layers'][0] // 2
    De, E, H, V = cfg['encoder_dim'], cfg['embed_dim'], cfg['decoder_dim'], cfg['vocab_size']
    V_pad = _round_up(V, LANE)
    kp = {}
    # encoder
    kp['enc_wu'] = p['user_emb_w'].T
    kp['enc_bu'] = p['user_emb_b'][None, :]
    kp['enc_wi'] = p['item_emb_w'].T
    kp['enc_bi'] = p['item_emb_b'][None, :]
    kp['enc_wf'] = p['feat_emb_w'].T
    kp['enc_bf'] = p['feat_emb_b'][None, :]
    wo = p['enc_out_w']                        # (De, 4*Ee), columns follow cat order
    kp['enc_wo_u'] = wo[:, :Ee].T
    kp['enc_wo_i'] = wo[:, Ee:2 * Ee].T
    kp['enc_wo_f'] = wo[:, 2 * Ee:].T
    kp['enc_bo'] = p['enc_out_b'][None, :]
    # gating / init state
    kp['fbeta_w'] = p['fbeta_w'].T
    kp['fbeta_b'] = p['fbeta_b'][None, :]
    kp['init_h_w'] = p['init_h_w'].T
    kp['init_h_b'] = p['init_h_b'][None, :]
    kp['init_c_w'] = p['init_c_w'].T
    kp['init_c_b'] = p['init_c_b'][None, :]
    # LSTMCell: gates fused into (in, 4H) matrices (PyTorch order i, f, g, o)
    wih, whh = p['lstm_w_ih'], p['lstm_w_hh']
    kp['lstm_we'] = wih[:, :E].T                                   # (E, 4H)
    kp['lstm_wa'] = wih[:, E:].T                                   # (De, 4H)
    kp['lstm_wh'] = whh.T                                          # (H, 4H)
    kp['lstm_b'] = (p['lstm_b_ih'] + p['lstm_b_hh'])[None, :]      # (1, 4H)
    # embedding table (lives in VMEM; gather is done in-kernel via one-hot matmul)
    kp['emb_table'] = p['emb_table']                               # (V, E)
    # fc head, lane-padded to 128 for dense output stores
    kp['fc_w'] = jnp.zeros((H, V_pad), F32).at[:, :V].set(p['fc_w'].T)
    kp['fc_b'] = jnp.zeros((1, V_pad), F32).at[:, :V].set(p['fc_b'][None, :])
    return kp


# ------------------------------ full forward ---------------------------------
def encoder_decoder_forward(x, y, p, kp, cfg):
    B = x.shape[0]
    L = y.shape[1]
    V = cfg['vocab_size']
    V_pad = _round_up(V, LANE)
    ni, nu = cfg['n_items'], cfg['n_users']
    B_pad = _round_up(B, SUBLANE)
    T_static = L - 1                      # static grid length (no per-batch recompiles)

    # ---- device-side caption lengths & sort (no per-step host work) ----
    y = y.astype(jnp.int32)
    cap_len = jnp.count_nonzero(y, axis=1).astype(jnp.int32)   # torch norm(0) == #nonzero
    sort_ind = jnp.argsort(-cap_len)                           # descending, stable
    caps_sorted = y[sort_ind]
    dl = cap_len[sort_ind] - 1                                 # decode lengths, sorted

    # single host transfer: only because the module returns decode_lengths as a
    # python list and the output time dim is max(decode_lengths).
    decode_lengths = [int(v) for v in jax.device_get(dl)]
    T_actual = max(decode_lengths)

    # ---- pad batch to a sublane multiple & build kernel operands ----
    pad = B_pad - B
    x_pad = jnp.pad(x, ((0, pad), (0, 0)))
    items = x_pad[:, :ni]
    users = x_pad[:, ni:ni + nu]
    feats = x_pad[:, ni + nu:]
    perm = jnp.zeros((B_pad, B_pad), F32).at[jnp.arange(B), sort_ind].set(1.0)
    dl_pad = jnp.pad(dl, (0, pad))[:, None].astype(jnp.int32)        # (B_pad, 1)
    caps_pad = jnp.pad(caps_sorted, ((0, pad), (0, 0)))
    caps_in = caps_pad[:, :T_static].T[:, :, None]                   # (T, B_pad, 1) int32

    # ---- one fused kernel: encoder + init state + all T decode steps ----
    preds_full = run_fused(users, items, feats, perm, dl_pad, caps_in,
                           kp, T_static, B_pad, V_pad, cfg)          # (T, B_pad, 128)

    predictions = jnp.transpose(preds_full[:T_actual, :B, :V], (1, 0, 2))   # (B, T, V)
    # alpha == 1.0 exactly for active steps (softmax over num_pixels == 1), else 0
    alphas = (dl[:, None] > jnp.arange(T_actual)[None, :]).astype(F32)[:, :, None]
    return predictions, caps_sorted, decode_lengths, alphas, sort_ind


# ---------------------------------- main --------------------------------------
if __name__ == "__main__":
    cfg = CFG
    key = jax.random.PRNGKey(0)
    k_param, k_x = jax.random.split(key)

    params = make_params(cfg, k_param)
    kparams = prepare_kernel_params(params, cfg)

    B = 4
    D_in = cfg['n_items'] + cfg['n_users'] + cfg['feature_dim']   # 26
    x = jax.random.normal(k_x, (B, D_in), dtype=F32)
    # captions: zeros are padding; nonzero counts give caption lengths
    y = jnp.array([[3, 5, 2, 7, 1, 0],    # length 5
                   [4, 9, 2, 0, 0, 0],    # length 3
                   [11, 6, 4, 8, 0, 0],   # length 4
                   [5, 13, 0, 0, 0, 0]],  # length 2
                  dtype=jnp.int32)

    preds, caps_sorted, decode_lengths, alphas, sort_ind = \
        encoder_decoder_forward(x, y, params, kparams, cfg)

    jax.block_until_ready((preds, caps_sorted, alphas, sort_ind))
    print("KERNEL_OK")
</pallas_src>

<mosaic_0001>
module attributes {stable_mosaic.version = 11 : i64} {
  func.func @fused_forward_kernel(%arg0: i32, %arg1: memref<8x8xf32, #tpu.memory_space<vmem>>, %arg2: memref<8x12xf32, #tpu.memory_space<vmem>>, %arg3: memref<8x6xf32, #tpu.memory_space<vmem>>, %arg4: memref<8x8xf32, #tpu.memory_space<vmem>>, %arg5: memref<8x1xi32, #tpu.memory_space<vmem>>, %arg6: memref<1x8x1xi32, #tpu.memory_space<vmem>>, %arg7: memref<20x8xf32, #tpu.memory_space<vmem>>, %arg8: memref<8x8xf32, #tpu.memory_space<vmem>>, %arg9: memref<1x8xf32, #tpu.memory_space<vmem>>, %arg10: memref<12x8xf32, #tpu.memory_space<vmem>>, %arg11: memref<1x8xf32, #tpu.memory_space<vmem>>, %arg12: memref<6x16xf32, #tpu.memory_space<vmem>>, %arg13: memref<1x16xf32, #tpu.memory_space<vmem>>, %arg14: memref<8x16xf32, #tpu.memory_space<vmem>>, %arg15: memref<8x16xf32, #tpu.memory_space<vmem>>, %arg16: memref<16x16xf32, #tpu.memory_space<vmem>>, %arg17: memref<1x16xf32, #tpu.memory_space<vmem>>, %arg18: memref<16x16xf32, #tpu.memory_space<vmem>>, %arg19: memref<1x16xf32, #tpu.memory_space<vmem>>, %arg20: memref<16x16xf32, #tpu.memory_space<vmem>>, %arg21: memref<1x16xf32, #tpu.memory_space<vmem>>, %arg22: memref<16x16xf32, #tpu.memory_space<vmem>>, %arg23: memref<1x16xf32, #tpu.memory_space<vmem>>, %arg24: memref<8x64xf32, #tpu.memory_space<vmem>>, %arg25: memref<16x64xf32, #tpu.memory_space<vmem>>, %arg26: memref<16x64xf32, #tpu.memory_space<vmem>>, %arg27: memref<1x64xf32, #tpu.memory_space<vmem>>, %arg28: memref<16x128xf32, #tpu.memory_space<vmem>>, %arg29: memref<1x128xf32, #tpu.memory_space<vmem>>, %arg30: memref<1x8x128xf32, #tpu.memory_space<vmem>>, %arg31: memref<8x16xf32, #tpu.memory_space<vmem>>, %arg32: memref<8x16xf32, #tpu.memory_space<vmem>>, %arg33: memref<8x16xf32, #tpu.memory_space<vmem>>) attributes {dimension_semantics = [#tpu.dimension_semantics<arbitrary>], iteration_bounds = array<i64: 5>, scalar_prefetch = 0 : i64, scratch_operands = 3 : i64, tpu.core_type = #tpu.core_type<tc>, window_params = [{pipeline_mode = #tpu.pipeline_mode<synchronous>, transform_indices = @transform_0, window_bounds = array<i64: 8, 8>}, {pipeline_mode = #tpu.pipeline_mode<synchronous>, transform_indices = @transform_1, window_bounds = array<i64: 8, 12>}, {pipeline_mode = #tpu.pipeline_mode<synchronous>, transform_indices = @transform_2, window_bounds = array<i64: 8, 6>}, {pipeline_mode = #tpu.pipeline_mode<synchronous>, transform_indices = @transform_3, window_bounds = array<i64: 8, 8>}, {pipeline_mode = #tpu.pipeline_mode<synchronous>, transform_indices = @transform_4, window_bounds = array<i64: 8, 1>}, {transform_indices = @transform_5, window_bounds = array<i64: 1, 8, 1>}, {pipeline_mode = #tpu.pipeline_mode<synchronous>, transform_indices = @transform_6, window_bounds = array<i64: 20, 8>}, {pipeline_mode = #tpu.pipeline_mode<synchronous>, transform_indices = @transform_7, window_bounds = array<i64: 8, 8>}, {pipeline_mode = #tpu.pipeline_mode<synchronous>, transform_indices = @transform_8, window_bounds = array<i64: 1, 8>}, {pipeline_mode = #tpu.pipeline_mode<synchronous>, transform_indices = @transform_9, window_bounds = array<i64: 12, 8>}, {pipeline_mode = #tpu.pipeline_mode<synchronous>, transform_indices = @transform_10, window_bounds = array<i64: 1, 8>}, {pipeline_mode = #tpu.pipeline_mode<synchronous>, transform_indices = @transform_11, window_bounds = array<i64: 6, 16>}, {pipeline_mode = #tpu.pipeline_mode<synchronous>, transform_indices = @transform_12, window_bounds = array<i64: 1, 16>}, {pipeline_mode = #tpu.pipeline_mode<synchronous>, transform_indices = @transform_13, window_bounds = array<i64: 8, 16>}, {pipeline_mode = #tpu.pipeline_mode<synchronous>, transform_indices = @transform_14, window_bounds = array<i64: 8, 16>}, {pipeline_mode = #tpu.pipeline_mode<synchronous>, transform_indices = @transform_15, window_bounds = array<i64: 16, 16>}, {pipeline_mode = #tpu.pipeline_mode<synchronous>, transform_indices = @transform_16, window_bounds = array<i64: 1, 16>}, {pipeline_mode = #tpu.pipeline_mode<synchronous>, transform_indices = @transform_17, window_bounds = array<i64: 16, 16>}, {pipeline_mode = #tpu.pipeline_mode<synchronous>, transform_indices = @transform_18, window_bounds = array<i64: 1, 16>}, {pipeline_mode = #tpu.pipeline_mode<synchronous>, transform_indices = @transform_19, window_bounds = array<i64: 16, 16>}, {pipeline_mode = #tpu.pipeline_mode<synchronous>, transform_indices = @transform_20, window_bounds = array<i64: 1, 16>}, {pipeline_mode = #tpu.pipeline_mode<synchronous>, transform_indices = @transform_21, window_bounds = array<i64: 16, 16>}, {pipeline_mode = #tpu.pipeline_mode<synchronous>, transform_indices = @transform_22, window_bounds = array<i64: 1, 16>}, {pipeline_mode = #tpu.pipeline_mode<synchronous>, transform_indices = @transform_23, window_bounds = array<i64: 8, 64>}, {pipeline_mode = #tpu.pipeline_mode<synchronous>, transform_indices = @transform_24, window_bounds = array<i64: 16, 64>}, {pipeline_mode = #tpu.pipeline_mode<synchronous>, transform_indices = @transform_25, window_bounds = array<i64: 16, 64>}, {pipeline_mode = #tpu.pipeline_mode<synchronous>, transform_indices = @transform_26, window_bounds = array<i64: 1, 64>}, {pipeline_mode = #tpu.pipeline_mode<synchronous>, transform_indices = @transform_27, window_bounds = array<i64: 16, 128>}, {pipeline_mode = #tpu.pipeline_mode<synchronous>, transform_indices = @transform_28, window_bounds = array<i64: 1, 128>}, {transform_indices = @transform_29, window_bounds = array<i64: 1, 8, 128>}]} {
    %c0_i32 = arith.constant 0 : i32
    %0 = arith.cmpi eq, %arg0, %c0_i32 : i32
    %1 = arith.extui %0 : i1 to i32
    %c0_i32_0 = arith.constant 0 : i32
    %2 = arith.cmpi ne, %1, %c0_i32_0 : i32
    scf.if %2 {
      %c0_45 = arith.constant 0 : index
      %c0_46 = arith.constant 0 : index
      %78 = vector.load %arg1[%c0_45, %c0_46] : memref<8x8xf32, #tpu.memory_space<vmem>>, vector<8x8xf32>
      %c0_47 = arith.constant 0 : index
      %c0_48 = arith.constant 0 : index
      %79 = vector.load %arg8[%c0_47, %c0_48] : memref<8x8xf32, #tpu.memory_space<vmem>>, vector<8x8xf32>
      %cst_49 = arith.constant dense<0.000000e+00> : vector<8x8xf32>
      %80 = tpu.matmul %78, %79, %cst_49 {dimension_numbers = #tpu.dot_dimension_numbers<[1], [0], [0], [1], [0, 0, 1, 1], [], []>} : vector<8x8xf32>, vector<8x8xf32>, vector<8x8xf32> -> vector<8x8xf32>
      %c0_50 = arith.constant 0 : index
      %c0_51 = arith.constant 0 : index
      %81 = vector.load %arg9[%c0_50, %c0_51] : memref<1x8xf32, #tpu.memory_space<vmem>>, vector<1x8xf32>
      %82 = vector.broadcast %81 : vector<1x8xf32> to vector<8x8xf32>
      %83 = arith.addf %80, %82 : vector<8x8xf32>
      %c0_52 = arith.constant 0 : index
      %c0_53 = arith.constant 0 : index
      %84 = vector.load %arg2[%c0_52, %c0_53] : memref<8x12xf32, #tpu.memory_space<vmem>>, vector<8x12xf32>
      %c0_54 = arith.constant 0 : index
      %c0_55 = arith.constant 0 : index
      %85 = vector.load %arg10[%c0_54, %c0_55] : memref<12x8xf32, #tpu.memory_space<vmem>>, vector<12x8xf32>
      %cst_56 = arith.constant dense<0.000000e+00> : vector<8x8xf32>
      %86 = tpu.matmul %84, %85, %cst_56 {dimension_numbers = #tpu.dot_dimension_numbers<[1], [0], [0], [1], [0, 0, 1, 1], [], []>} : vector<8x12xf32>, vector<12x8xf32>, vector<8x8xf32> -> vector<8x8xf32>
      %c0_57 = arith.constant 0 : index
      %c0_58 = arith.constant 0 : index
      %87 = vector.load %arg11[%c0_57, %c0_58] : memref<1x8xf32, #tpu.memory_space<vmem>>, vector<1x8xf32>
      %88 = vector.broadcast %87 : vector<1x8xf32> to vector<8x8xf32>
      %89 = arith.addf %86, %88 : vector<8x8xf32>
      %c0_59 = arith.constant 0 : index
      %c0_60 = arith.constant 0 : index
      %90 = vector.load %arg3[%c0_59, %c0_60] : memref<8x6xf32, #tpu.memory_space<vmem>>, vector<8x6xf32>
      %c0_61 = arith.constant 0 : index
      %c0_62 = arith.constant 0 : index
      %91 = vector.load %arg12[%c0_61, %c0_62] : memref<6x16xf32, #tpu.memory_space<vmem>>, vector<6x16xf32>
      %cst_63 = arith.constant dense<0.000000e+00> : vector<8x16xf32>
      %92 = tpu.matmul %90, %91, %cst_63 {dimension_numbers = #tpu.dot_dimension_numbers<[1], [0], [0], [1], [0, 0, 1, 1], [], []>} : vector<8x6xf32>, vector<6x16xf32>, vector<8x16xf32> -> vector<8x16xf32>
      %c0_64 = arith.constant 0 : index
      %c0_65 = arith.constant 0 : index
      %93 = vector.load %arg13[%c0_64, %c0_65] : memref<1x16xf32, #tpu.memory_space<vmem>>, vector<1x16xf32>
      %94 = vector.broadcast %93 : vector<1x16xf32> to vector<8x16xf32>
      %95 = arith.addf %92, %94 : vector<8x16xf32>
      %c0_66 = arith.constant 0 : index
      %c0_67 = arith.constant 0 : index
      %96 = vector.load %arg14[%c0_66, %c0_67] : memref<8x16xf32, #tpu.memory_space<vmem>>, vector<8x16xf32>
      %cst_68 = arith.constant dense<0.000000e+00> : vector<8x16xf32>
      %97 = tpu.matmul %83, %96, %cst_68 {dimension_numbers = #tpu.dot_dimension_numbers<[1], [0], [0], [1], [0, 0, 1, 1], [], []>} : vector<8x8xf32>, vector<8x16xf32>, vector<8x16xf32> -> vector<8x16xf32>
      %c0_69 = arith.constant 0 : index
      %c0_70 = arith.constant 0 : index
      %98 = vector.load %arg15[%c0_69, %c0_70] : memref<8x16xf32, #tpu.memory_space<vmem>>, vector<8x16xf32>
      %cst_71 = arith.constant dense<0.000000e+00> : vector<8x16xf32>
      %99 = tpu.matmul %89, %98, %cst_71 {dimension_numbers = #tpu.dot_dimension_numbers<[1], [0], [0], [1], [0, 0, 1, 1], [], []>} : vector<8x8xf32>, vector<8x16xf32>, vector<8x16xf32> -> vector<8x16xf32>
      %100 = arith.addf %97, %99 : vector<8x16xf32>
      %c0_72 = arith.constant 0 : index
      %c0_73 = arith.constant 0 : index
      %101 = vector.load %arg16[%c0_72, %c0_73] : memref<16x16xf32, #tpu.memory_space<vmem>>, vector<16x16xf32>
      %cst_74 = arith.constant dense<0.000000e+00> : vector<8x16xf32>
      %102 = tpu.matmul %95, %101, %cst_74 {dimension_numbers = #tpu.dot_dimension_numbers<[1], [0], [0], [1], [0, 0, 1, 1], [], []>} : vector<8x16xf32>, vector<16x16xf32>, vector<8x16xf32> -> vector<8x16xf32>
      %103 = arith.addf %100, %102 : vector<8x16xf32>
      %c0_75 = arith.constant 0 : index
      %c0_76 = arith.constant 0 : index
      %104 = vector.load %arg17[%c0_75, %c0_76] : memref<1x16xf32, #tpu.memory_space<vmem>>, vector<1x16xf32>
      %105 = vector.broadcast %104 : vector<1x16xf32> to vector<8x16xf32>
      %106 = arith.addf %103, %105 : vector<8x16xf32>
      %c0_77 = arith.constant 0 : index
      %c0_78 = arith.constant 0 : index
      %107 = vector.load %arg4[%c0_77, %c0_78] : memref<8x8xf32, #tpu.memory_space<vmem>>, vector<8x8xf32>
      %cst_79 = arith.constant dense<0.000000e+00> : vector<8x16xf32>
      %108 = tpu.matmul %107, %106, %cst_79 {dimension_numbers = #tpu.dot_dimension_numbers<[1], [0], [0], [1], [0, 0, 1, 1], [], []>} : vector<8x8xf32>, vector<8x16xf32>, vector<8x16xf32> -> vector<8x16xf32>
      %c0_80 = arith.constant 0 : index
      %c0_81 = arith.constant 0 : index
      %109 = vector.load %arg31[%c0_80, %c0_81] : memref<8x16xf32, #tpu.memory_space<vmem>>, vector<8x16xf32>
      tpu.vector_store %arg31[%c0_80, %c0_81], %108 {strides = array<i32>} : memref<8x16xf32, #tpu.memory_space<vmem>>, vector<8x16xf32>,
      %c0_82 = arith.constant 0 : index
      %c0_83 = arith.constant 0 : index
      %110 = vector.load %arg18[%c0_82, %c0_83] : memref<16x16xf32, #tpu.memory_space<vmem>>, vector<16x16xf32>
      %cst_84 = arith.constant dense<0.000000e+00> : vector<8x16xf32>
      %111 = tpu.matmul %108, %110, %cst_84 {dimension_numbers = #tpu.dot_dimension_numbers<[1], [0], [0], [1], [0, 0, 1, 1], [], []>} : vector<8x16xf32>, vector<16x16xf32>, vector<8x16xf32> -> vector<8x16xf32>
      %c0_85 = arith.constant 0 : index
      %c0_86 = arith.constant 0 : index
      %112 = vector.load %arg19[%c0_85, %c0_86] : memref<1x16xf32, #tpu.memory_space<vmem>>, vector<1x16xf32>
      %113 = vector.broadcast %112 : vector<1x16xf32> to vector<8x16xf32>
      %114 = arith.addf %111, %113 : vector<8x16xf32>
      %c0_87 = arith.constant 0 : index
      %c0_88 = arith.constant 0 : index
      %115 = vector.load %arg32[%c0_87, %c0_88] : memref<8x16xf32, #tpu.memory_space<vmem>>, vector<8x16xf32>
      tpu.vector_store %arg32[%c0_87, %c0_88], %114 {strides = array<i32>} : memref<8x16xf32, #tpu.memory_space<vmem>>, vector<8x16xf32>,
      %c0_89 = arith.constant 0 : index
      %c0_90 = arith.constant 0 : index
      %116 = vector.load %arg20[%c0_89, %c0_90] : memref<16x16xf32, #tpu.memory_space<vmem>>, vector<16x16xf32>
      %cst_91 = arith.constant dense<0.000000e+00> : vector<8x16xf32>
      %117 = tpu.matmul %108, %116, %cst_91 {dimension_numbers = #tpu.dot_dimension_numbers<[1], [0], [0], [1], [0, 0, 1, 1], [], []>} : vector<8x16xf32>, vector<16x16xf32>, vector<8x16xf32> -> vector<8x16xf32>
      %c0_92 = arith.constant 0 : index
      %c0_93 = arith.constant 0 : index
      %118 = vector.load %arg21[%c0_92, %c0_93] : memref<1x16xf32, #tpu.memory_space<vmem>>, vector<1x16xf32>
      %119 = vector.broadcast %118 : vector<1x16xf32> to vector<8x16xf32>
      %120 = arith.addf %117, %119 : vector<8x16xf32>
      %c0_94 = arith.constant 0 : index
      %c0_95 = arith.constant 0 : index
      %121 = vector.load %arg33[%c0_94, %c0_95] : memref<8x16xf32, #tpu.memory_space<vmem>>, vector<8x16xf32>
      tpu.vector_store %arg33[%c0_94, %c0_95], %120 {strides = array<i32>} : memref<8x16xf32, #tpu.memory_space<vmem>>, vector<8x16xf32>,
    } else {
    }
    %c0 = arith.constant 0 : index
    %c0_1 = arith.constant 0 : index
    %3 = vector.load %arg31[%c0, %c0_1] : memref<8x16xf32, #tpu.memory_space<vmem>>, vector<8x16xf32>
    %c0_2 = arith.constant 0 : index
    %c0_3 = arith.constant 0 : index
    %4 = vector.load %arg32[%c0_2, %c0_3] : memref<8x16xf32, #tpu.memory_space<vmem>>, vector<8x16xf32>
    %c0_4 = arith.constant 0 : index
    %c0_5 = arith.constant 0 : index
    %5 = vector.load %arg33[%c0_4, %c0_5] : memref<8x16xf32, #tpu.memory_space<vmem>>, vector<8x16xf32>
    %c0_6 = arith.constant 0 : index
    %c0_7 = arith.constant 0 : index
    %6 = vector.load %arg22[%c0_6, %c0_7] : memref<16x16xf32, #tpu.memory_space<vmem>>, vector<16x16xf32>
    %cst = arith.constant dense<0.000000e+00> : vector<8x16xf32>
    %7 = tpu.matmul %4, %6, %cst {dimension_numbers = #tpu.dot_dimension_numbers<[1], [0], [0], [1], [0, 0, 1, 1], [], []>} : vector<8x16xf32>, vector<16x16xf32>, vector<8x16xf32> -> vector<8x16xf32>
    %c0_8 = arith.constant 0 : index
    %c0_9 = arith.constant 0 : index
    %8 = vector.load %arg23[%c0_8, %c0_9] : memref<1x16xf32, #tpu.memory_space<vmem>>, vector<1x16xf32>
    %9 = vector.broadcast %8 : vector<1x16xf32> to vector<8x16xf32>
    %10 = arith.addf %7, %9 : vector<8x16xf32>
    %11 = arith.negf %10 : vector<8x16xf32>
    %12 = math.exp %11 : vector<8x16xf32>
    %cst_10 = arith.constant 1.000000e+00 : f32
    %13 = vector.broadcast %cst_10 : f32 to vector<8x16xf32>
    %14 = arith.addf %13, %12 : vector<8x16xf32>
    %15 = arith.divf %13, %14 : vector<8x16xf32>
    %16 = arith.mulf %15, %3 : vector<8x16xf32>
    %c0_11 = arith.constant 0 : index
    %c0_12 = arith.constant 0 : index
    %c0_13 = arith.constant 0 : index
    %17 = vector.load %arg6[%c0_11, %c0_12, %c0_13] : memref<1x8x1xi32, #tpu.memory_space<vmem>>, vector<1x8x1xi32>
    %18 = vector.shape_cast %17 : vector<1x8x1xi32> to vector<8x1xi32>
    %19 = tpu.iota {dimensions = array<i32: 1>} : vector<8x20xi32>
    %20 = vector.broadcast %18 : vector<8x1xi32> to vector<8x20xi32>
    %21 = arith.cmpi eq, %20, %19 : vector<8x20xi32>
    %22 = arith.extui %21 : vector<8x20xi1> to vector<8x20xi32>
    %23 = arith.sitofp %22 : vector<8x20xi32> to vector<8x20xf32>
    %c0_14 = arith.constant 0 : index
    %c0_15 = arith.constant 0 : index
    %24 = vector.load %arg7[%c0_14, %c0_15] : memref<20x8xf32, #tpu.memory_space<vmem>>, vector<20x8xf32>
    %cst_16 = arith.constant dense<0.000000e+00> : vector<8x8xf32>
    %25 = tpu.matmul %23, %24, %cst_16 {dimension_numbers = #tpu.dot_dimension_numbers<[1], [0], [0], [1], [0, 0, 1, 1], [], []>} : vector<8x20xf32>, vector<20x8xf32>, vector<8x8xf32> -> vector<8x8xf32>
    %c0_17 = arith.constant 0 : index
    %c0_18 = arith.constant 0 : index
    %26 = vector.load %arg24[%c0_17, %c0_18] : memref<8x64xf32, #tpu.memory_space<vmem>>, vector<8x64xf32>
    %cst_19 = arith.constant dense<0.000000e+00> : vector<8x64xf32>
    %27 = tpu.matmul %25, %26, %cst_19 {dimension_numbers = #tpu.dot_dimension_numbers<[1], [0], [0], [1], [0, 0, 1, 1], [], []>} : vector<8x8xf32>, vector<8x64xf32>, vector<8x64xf32> -> vector<8x64xf32>
    %c0_20 = arith.constant 0 : index
    %c0_21 = arith.constant 0 : index
    %28 = vector.load %arg25[%c0_20, %c0_21] : memref<16x64xf32, #tpu.memory_space<vmem>>, vector<16x64xf32>
    %cst_22 = arith.constant dense<0.000000e+00> : vector<8x64xf32>
    %29 = tpu.matmul %16, %28, %cst_22 {dimension_numbers = #tpu.dot_dimension_numbers<[1], [0], [0], [1], [0, 0, 1, 1], [], []>} : vector<8x16xf32>, vector<16x64xf32>, vector<8x64xf32> -> vector<8x64xf32>
    %30 = arith.addf %27, %29 : vector<8x64xf32>
    %c0_23 = arith.constant 0 : index
    %c0_24 = arith.constant 0 : index
    %31 = vector.load %arg26[%c0_23, %c0_24] : memref<16x64xf32, #tpu.memory_space<vmem>>, vector<16x64xf32>
    %cst_25 = arith.constant dense<0.000000e+00> : vector<8x64xf32>
    %32 = tpu.matmul %4, %31, %cst_25 {dimension_numbers = #tpu.dot_dimension_numbers<[1], [0], [0], [1], [0, 0, 1, 1], [], []>} : vector<8x16xf32>, vector<16x64xf32>, vector<8x64xf32> -> vector<8x64xf32>
    %33 = arith.addf %30, %32 : vector<8x64xf32>
    %c0_26 = arith.constant 0 : index
    %c0_27 = arith.constant 0 : index
    %34 = vector.load %arg27[%c0_26, %c0_27] : memref<1x64xf32, #tpu.memory_space<vmem>>, vector<1x64xf32>
    %35 = vector.broadcast %34 : vector<1x64xf32> to vector<8x64xf32>
    %36 = arith.addf %33, %35 : vector<8x64xf32>
    %37 = vector.extract_strided_slice %36 {offsets = [0, 0], sizes = [8, 16], strides = [1, 1]} : vector<8x64xf32> to vector<8x16xf32>
    %38 = arith.negf %37 : vector<8x16xf32>
    %39 = math.exp %38 : vector<8x16xf32>
    %cst_28 = arith.constant 1.000000e+00 : f32
    %40 = vector.broadcast %cst_28 : f32 to vector<8x16xf32>
    %41 = arith.addf %40, %39 : vector<8x16xf32>
    %42 = arith.divf %40, %41 : vector<8x16xf32>
    %43 = vector.extract_strided_slice %36 {offsets = [0, 16], sizes = [8, 16], strides = [1, 1]} : vector<8x64xf32> to vector<8x16xf32>
    %44 = arith.negf %43 : vector<8x16xf32>
    %45 = math.exp %44 : vector<8x16xf32>
    %cst_29 = arith.constant 1.000000e+00 : f32
    %46 = vector.broadcast %cst_29 : f32 to vector<8x16xf32>
    %47 = arith.addf %46, %45 : vector<8x16xf32>
    %48 = arith.divf %46, %47 : vector<8x16xf32>
    %49 = vector.extract_strided_slice %36 {offsets = [0, 32], sizes = [8, 16], strides = [1, 1]} : vector<8x64xf32> to vector<8x16xf32>
    %50 = math.tanh %49 : vector<8x16xf32>
    %51 = vector.extract_strided_slice %36 {offsets = [0, 48], sizes = [8, 16], strides = [1, 1]} : vector<8x64xf32> to vector<8x16xf32>
    %52 = arith.negf %51 : vector<8x16xf32>
    %53 = math.exp %52 : vector<8x16xf32>
    %cst_30 = arith.constant 1.000000e+00 : f32
    %54 = vector.broadcast %cst_30 : f32 to vector<8x16xf32>
    %55 = arith.addf %54, %53 : vector<8x16xf32>
    %56 = arith.divf %54, %55 : vector<8x16xf32>
    %57 = arith.mulf %48, %5 : vector<8x16xf32>
    %58 = arith.mulf %42, %50 : vector<8x16xf32>
    %59 = arith.addf %57, %58 : vector<8x16xf32>
    %60 = math.tanh %59 : vector<8x16xf32>
    %61 = arith.mulf %56, %60 : vector<8x16xf32>
    %c0_31 = arith.constant 0 : index
    %c0_32 = arith.constant 0 : index
    %62 = vector.load %arg32[%c0_31, %c0_32] : memref<8x16xf32, #tpu.memory_space<vmem>>, vector<8x16xf32>
    tpu.vector_store %arg32[%c0_31, %c0_32], %61 {strides = array<i32>} : memref<8x16xf32, #tpu.memory_space<vmem>>, vector<8x16xf32>,
    %c0_33 = arith.constant 0 : index
    %c0_34 = arith.constant 0 : index
    %63 = vector.load %arg33[%c0_33, %c0_34] : memref<8x16xf32, #tpu.memory_space<vmem>>, vector<8x16xf32>
    tpu.vector_store %arg33[%c0_33, %c0_34], %59 {strides = array<i32>} : memref<8x16xf32, #tpu.memory_space<vmem>>, vector<8x16xf32>,
    %c0_35 = arith.constant 0 : index
    %c0_36 = arith.constant 0 : index
    %64 = vector.load %arg28[%c0_35, %c0_36] : memref<16x128xf32, #tpu.memory_space<vmem>>, vector<16x128xf32>
    %cst_37 = arith.constant dense<0.000000e+00> : vector<8x128xf32>
    %65 = tpu.matmul %61, %64, %cst_37 {dimension_numbers = #tpu.dot_dimension_numbers<[1], [0], [0], [1], [0, 0, 1, 1], [], []>} : vector<8x16xf32>, vector<16x128xf32>, vector<8x128xf32> -> vector<8x128xf32>
    %c0_38 = arith.constant 0 : index
    %c0_39 = arith.constant 0 : index
    %66 = vector.load %arg29[%c0_38, %c0_39] : memref<1x128xf32, #tpu.memory_space<vmem>>, vector<1x128xf32>
    %67 = vector.broadcast %66 : vector<1x128xf32> to vector<8x128xf32>
    %68 = arith.addf %65, %67 : vector<8x128xf32>
    %c0_40 = arith.constant 0 : index
    %c0_41 = arith.constant 0 : index
    %69 = vector.load %arg5[%c0_40, %c0_41] : memref<8x1xi32, #tpu.memory_space<vmem>>, vector<8x1xi32>
    %70 = vector.broadcast %arg0 : i32 to vector<8x1xi32>
    %71 = arith.cmpi sgt, %69, %70 : vector<8x1xi32>
    %72 = arith.extui %71 : vector<8x1xi1> to vector<8x1xi32>
    %73 = arith.sitofp %72 : vector<8x1xi32> to vector<8x1xf32>
    %74 = vector.broadcast %73 : vector<8x1xf32> to vector<8x128xf32>
    %75 = arith.mulf %68, %74 : vector<8x128xf32>
    %76 = vector.shape_cast %75 : vector<8x128xf32> to vector<1x8x128xf32>
    %c0_42 = arith.constant 0 : index
    %c0_43 = arith.constant 0 : index
    %c0_44 = arith.constant 0 : index
    %77 = vector.load %arg30[%c0_42, %c0_43, %c0_44] : memref<1x8x128xf32, #tpu.memory_space<vmem>>, vector<1x8x128xf32>
    tpu.vector_store %arg30[%c0_42, %c0_43, %c0_44], %76 {strides = array<i32>} : memref<1x8x128xf32, #tpu.memory_space<vmem>>, vector<1x8x128xf32>,
    return
  }
  func.func @transform_0(%arg0: i32) -> (i32, i32) {
    %c0_i32 = arith.constant 0 : i32
    %c0_i32_0 = arith.constant 0 : i32
    %c0_i32_1 = arith.constant 0 : i32
    return %c0_i32, %c0_i32_0 : i32, i32
  }
  func.func @transform_1(%arg0: i32) -> (i32, i32) {
    %c0_i32 = arith.constant 0 : i32
    %c0_i32_0 = arith.constant 0 : i32
    %c0_i32_1 = arith.constant 0 : i32
    return %c0_i32, %c0_i32_0 : i32, i32
  }
  func.func @transform_2(%arg0: i32) -> (i32, i32) {
    %c0_i32 = arith.constant 0 : i32
    %c0_i32_0 = arith.constant 0 : i32
    %c0_i32_1 = arith.constant 0 : i32
    return %c0_i32, %c0_i32_0 : i32, i32
  }
  func.func @transform_3(%arg0: i32) -> (i32, i32) {
    %c0_i32 = arith.constant 0 : i32
    %c0_i32_0 = arith.constant 0 : i32
    %c0_i32_1 = arith.constant 0 : i32
    return %c0_i32, %c0_i32_0 : i32, i32
  }
  func.func @transform_4(%arg0: i32) -> (i32, i32) {
    %c0_i32 = arith.constant 0 : i32
    %c0_i32_0 = arith.constant 0 : i32
    %c0_i32_1 = arith.constant 0 : i32
    return %c0_i32, %c0_i32_0 : i32, i32
  }
  func.func @transform_5(%arg0: i32) -> (i32, i32, i32) {
    %c0_i32 = arith.constant 0 : i32
    %c0_i32_0 = arith.constant 0 : i32
    %c0_i32_1 = arith.constant 0 : i32
    return %arg0, %c0_i32, %c0_i32_0 : i32, i32, i32
  }
  func.func @transform_6(%arg0: i32) -> (i32, i32) {
    %c0_i32 = arith.constant 0 : i32
    %c0_i32_0 = arith.constant 0 : i32
    %c0_i32_1 = arith.constant 0 : i32
    return %c0_i32, %c0_i32_0 : i32, i32
  }
  func.func @transform_7(%arg0: i32) -> (i32, i32) {
    %c0_i32 = arith.constant 0 : i32
    %c0_i32_0 = arith.constant 0 : i32
    %c0_i32_1 = arith.constant 0 : i32
    return %c0_i32, %c0_i32_0 : i32, i32
  }
  func.func @transform_8(%arg0: i32) -> (i32, i32) {
    %c0_i32 = arith.constant 0 : i32
    %c0_i32_0 = arith.constant 0 : i32
    %c0_i32_1 = arith.constant 0 : i32
    return %c0_i32, %c0_i32_0 : i32, i32
  }
  func.func @transform_9(%arg0: i32) -> (i32, i32) {
    %c0_i32 = arith.constant 0 : i32
    %c0_i32_0 = arith.constant 0 : i32
    %c0_i32_1 = arith.constant 0 : i32
    return %c0_i32, %c0_i32_0 : i32, i32
  }
  func.func @transform_10(%arg0: i32) -> (i32, i32) {
    %c0_i32 = arith.constant 0 : i32
    %c0_i32_0 = arith.constant 0 : i32
    %c0_i32_1 = arith.constant 0 : i32
    return %c0_i32, %c0_i32_0 : i32, i32
  }
  func.func @transform_11(%arg0: i32) -> (i32, i32) {
    %c0_i32 = arith.constant 0 : i32
    %c0_i32_0 = arith.constant 0 : i32
    %c0_i32_1 = arith.constant 0 : i32
    return %c0_i32, %c0_i32_0 : i32, i32
  }
  func.func @transform_12(%arg0: i32) -> (i32, i32) {
    %c0_i32 = arith.constant 0 : i32
    %c0_i32_0 = arith.constant 0 : i32
    %c0_i32_1 = arith.constant 0 : i32
    return %c0_i32, %c0_i32_0 : i32, i32
  }
  func.func @transform_13(%arg0: i32) -> (i32, i32) {
    %c0_i32 = arith.constant 0 : i32
    %c0_i32_0 = arith.constant 0 : i32
    %c0_i32_1 = arith.constant 0 : i32
    return %c0_i32, %c0_i32_0 : i32, i32
  }
  func.func @transform_14(%arg0: i32) -> (i32, i32) {
    %c0_i32 = arith.constant 0 : i32
    %c0_i32_0 = arith.constant 0 : i32
    %c0_i32_1 = arith.constant 0 : i32
    return %c0_i32, %c0_i32_0 : i32, i32
  }
  func.func @transform_15(%arg0: i32) -> (i32, i32) {
    %c0_i32 = arith.constant 0 : i32
    %c0_i32_0 = arith.constant 0 : i32
    %c0_i32_1 = arith.constant 0 : i32
    return %c0_i32, %c0_i32_0 : i32, i32
  }
  func.func @transform_16(%arg0: i32) -> (i32, i32) {
    %c0_i32 = arith.constant 0 : i32
    %c0_i32_0 = arith.constant 0 : i32
    %c0_i32_1 = arith.constant 0 : i32
    return %c0_i32, %c0_i32_0 : i32, i32
  }
  func.func @transform_17(%arg0: i32) -> (i32, i32) {
    %c0_i32 = arith.constant 0 : i32
    %c0_i32_0 = arith.constant 0 : i32
    %c0_i32_1 = arith.constant 0 : i32
    return %c0_i32, %c0_i32_0 : i32, i32
  }
  func.func @transform_18(%arg0: i32) -> (i32, i32) {
    %c0_i32 = arith.constant 0 : i32
    %c0_i32_0 = arith.constant 0 : i32
    %c0_i32_1 = arith.constant 0 : i32
    return %c0_i32, %c0_i32_0 : i32, i32
  }
  func.func @transform_19(%arg0: i32) -> (i32, i32) {
    %c0_i32 = arith.constant 0 : i32
    %c0_i32_0 = arith.constant 0 : i32
    %c0_i32_1 = arith.constant 0 : i32
    return %c0_i32, %c0_i32_0 : i32, i32
  }
  func.func @transform_20(%arg0: i32) -> (i32, i32) {
    %c0_i32 = arith.constant 0 : i32
    %c0_i32_0 = arith.constant 0 : i32
    %c0_i32_1 = arith.constant 0 : i32
    return %c0_i32, %c0_i32_0 : i32, i32
  }
  func.func @transform_21(%arg0: i32) -> (i32, i32) {
    %c0_i32 = arith.constant 0 : i32
    %c0_i32_0 = arith.constant 0 : i32
    %c0_i32_1 = arith.constant 0 : i32
    return %c0_i32, %c0_i32_0 : i32, i32
  }
  func.func @transform_22(%arg0: i32) -> (i32, i32) {
    %c0_i32 = arith.constant 0 : i32
    %c0_i32_0 = arith.constant 0 : i32
    %c0_i32_1 = arith.constant 0 : i32
    return %c0_i32, %c0_i32_0 : i32, i32
  }
  func.func @transform_23(%arg0: i32) -> (i32, i32) {
    %c0_i32 = arith.constant 0 : i32
    %c0_i32_0 = arith.constant 0 : i32
    %c0_i32_1 = arith.constant 0 : i32
    return %c0_i32, %c0_i32_0 : i32, i32
  }
  func.func @transform_24(%arg0: i32) -> (i32, i32) {
    %c0_i32 = arith.constant 0 : i32
    %c0_i32_0 = arith.constant 0 : i32
    %c0_i32_1 = arith.constant 0 : i32
    return %c0_i32, %c0_i32_0 : i32, i32
  }
  func.func @transform_25(%arg0: i32) -> (i32, i32) {
    %c0_i32 = arith.constant 0 : i32
    %c0_i32_0 = arith.constant 0 : i32
    %c0_i32_1 = arith.constant 0 : i32
    return %c0_i32, %c0_i32_0 : i32, i32
  }
  func.func @transform_26(%arg0: i32) -> (i32, i32) {
    %c0_i32 = arith.constant 0 : i32
    %c0_i32_0 = arith.constant 0 : i32
    %c0_i32_1 = arith.constant 0 : i32
    return %c0_i32, %c0_i32_0 : i32, i32
  }
  func.func @transform_27(%arg0: i32) -> (i32, i32) {
    %c0_i32 = arith.constant 0 : i32
    %c0_i32_0 = arith.constant 0 : i32
    %c0_i32_1 = arith.constant 0 : i32
    return %c0_i32, %c0_i32_0 : i32, i32
  }
  func.func @transform_28(%arg0: i32) -> (i32, i32) {
    %c0_i32 = arith.constant 0 : i32
    %c0_i32_0 = arith.constant 0 : i32
    %c0_i32_1 = arith.constant 0 : i32
    return %c0_i32, %c0_i32_0 : i32, i32
  }
  func.func @transform_29(%arg0: i32) -> (i32, i32, i32) {
    %c0_i32 = arith.constant 0 : i32
    %c0_i32_0 = arith.constant 0 : i32
    %c0_i32_1 = arith.constant 0 : i32
    return %arg0, %c0_i32, %c0_i32_0 : i32, i32, i32
  }
}

</mosaic_0001>

<bundles_post_ra>
// kernel: tpu_custom_call.1
= control target key start
LH: loop header
LB: loop body
LE: loop exit
PB: predicated region body
PF: predicated region fallthrough
CT: control target
= control target key end

     0   :  { %s2967_s6 = smov 1   ;;  %s2968_s10 = smov 2   ;;  %s3471_s0 = inlined_call_operand.smem [shape: u32[30], index: -1, kind: input, shape index: {}] }
   0x1   :  { %s3023_s5 = sld [smem:[%s3471_s0]]   ;;  %s2969_s14 = smov 3  }
   0x2   :  { %s3028_s9 = sld [smem:[%s3471_s0 + %s2967_s6]]   ;;  %s2970_s18 = smov 4  }
   0x3   :  { %s3033_s13 = sld [smem:[%s3471_s0 + %s2968_s10]]   ;;  %s2971_s22 = smov 5  }
   0x4   :  { %s3038_s17 = sld [smem:[%s3471_s0 + %s2969_s14]]   ;;  %s2972_s26 = smov 6  }
   0x5   :  { %s3043_s21 = sld [smem:[%s3471_s0 + %s2970_s18]]   ;;  %s2973_s30 = smov 7  }
   0x6   :  { %s3048_s25 = sld [smem:[%s3471_s0 + %s2971_s22]]   ;;  %s2974_s4 = smov 8  }
   0x7   :  { %3492 = sst [smem:[#allocation19_spill]] %s3023_s5  ;;  %s2975_s10 = smov 9  }
   0x8   :  { %3493 = sst [smem:[#allocation20_spill]] %s3028_s9  ;;  %s2976_s15 = smov 10  }
   0x9   :  { %s3053_s29 = sld [smem:[%s3471_s0 + %s2972_s26]]   ;;  %s2977_s20 = smov 11  }
   0xa   :  { %s3058_s3 = sld [smem:[%s3471_s0 + %s2973_s30]]   ;;  %s2978_s26 = smov 12  }
   0xb   :  { %3494 = sst [smem:[#allocation21_spill]] %s3043_s21  ;;  %s2979_s1 = smov 13  }
   0xc   :  { %s3063_s8 = sld [smem:[%s3471_s0 + %s2974_s4]]   ;;  %s2980_s7 = smov 14  }
   0xd   :  { %s3068_s14 = sld [smem:[%s3471_s0 + %s2975_s10]]   ;;  %s2982_s22 = smov 16  }
   0xe   :  { %s3073_s19 = sld [smem:[%s3471_s0 + %s2976_s15]]   ;;  %s2981_s15 = smov 15  }
   0xf   :  { %3495 = sst [smem:[#allocation22_spill]] %s3053_s29  ;;  %s2983_s28 = smov 17  }
  0x10   :  { %3496 = sst [smem:[#allocation23_spill]] %s3058_s3 }
  0x11   :  { %s3078_s24 = sld [smem:[%s3471_s0 + %s2977_s20]]  }
  0x12   :  { %3497 = sst [smem:[#allocation24_spill]] %s3063_s8 }
  0x13   :  { %s3083_s30 = sld [smem:[%s3471_s0 + %s2978_s26]]  }
  0x14   :  { %s3088_s6 = sld [smem:[%s3471_s0 + %s2979_s1]]  }
  0x15   :  { %s3093_s12 = sld [smem:[%s3471_s0 + %s2980_s7]]   ;;  %s2984_s7 = smov 18  }
  0x16   :  { %s3098_s20 = sld [smem:[%s3471_s0 + %s2981_s15]]   ;;  %s2985_s15 = smov 19  }
  0x17   :  { %s3103_s27 = sld [smem:[%s3471_s0 + %s2982_s22]]   ;;  %s2986_s22 = smov 20  }
  0x18   :  { %s3108_s4 = sld [smem:[%s3471_s0 + %s2983_s28]]   ;;  %s2987_s28 = smov 21  }
  0x19   :  { %s3113_s21 = sld [smem:[%s3471_s0 + %s2984_s7]]   ;;  %s2988_s7 = smov 22  }
  0x1a   :  { %3498 = sst [smem:[#allocation25_spill]] %s3088_s6 }
  0x1b   :  { %s3118_s29 = sld [smem:[%s3471_s0 + %s2985_s15]]   ;;  %s2989_s15 = smov 23  }
  0x1d   :  { %3499 = sst [smem:[#allocation26_spill]] %s3103_s27 }
  0x1e   :  { %3500 = sst [smem:[#allocation27_spill]] %s3108_s4 }
  0x1f   :  { %3501 = sst [smem:[#allocation28_spill]] %s3113_s21 }
  0x20   :  { %s3123_s27 = sld [smem:[%s3471_s0 + %s2986_s22]]   ;;  %s2990_s22 = smov 24  }
  0x21   :  { %3502 = sst [smem:[#allocation29_spill]] %s3118_s29 }
  0x22   :  { %s3128_s4 = sld [smem:[%s3471_s0 + %s2987_s28]]   ;;  %s2991_s28 = smov 25  }
  0x23   :  { %s3133_s21 = sld [smem:[%s3471_s0 + %s2988_s7]]   ;;  %s2992_s7 = smov 26  }
  0x24   :  { %s3138_s29 = sld [smem:[%s3471_s0 + %s2989_s15]]   ;;  %s2993_s15 = smov 27  }
  0x26   :  { %3503 = sst [smem:[#allocation30_spill]] %s3123_s27 }
  0x27   :  { %s3143_s27 = sld [smem:[%s3471_s0 + %s2990_s22]]   ;;  %s2994_s22 = smov 28  }
  0x28   :  { %3504 = sst [smem:[#allocation31_spill]] %s3128_s4 }
  0x29   :  { %3505 = sst [smem:[#allocation32_spill]] %s3133_s21 }
  0x2a   :  { %3506 = sst [smem:[#allocation33_spill]] %s3138_s29 }
  0x2b   :  { %s3148_s4 = sld [smem:[%s3471_s0 + %s2991_s28]]   ;;  %s2995_s28 = smov 29  }
  0x2c   :  { %s3153_s21 = sld [smem:[%s3471_s0 + %s2992_s7]]  }
  0x2d   :  { %3507 = sst [smem:[#allocation34_spill]] %s3143_s27 }
  0x2e   :  { %s3158_s29 = sld [smem:[%s3471_s0 + %s2993_s15]]  }
  0x2f   :  { %s3163_s27 = sld [smem:[%s3471_s0 + %s2994_s22]]  }
  0x31   :  { %3508 = sst [smem:[#allocation35_spill]] %s3148_s4 }
  0x32   :  { %s3168_s4 = sld [smem:[%s3471_s0 + %s2995_s28]]  }
  0x33   :  { %64 = vsyncpa [#allocation6], 0 }
  0x34   :  { %65 = vsyncpa [#allocation9], 0 }
  0x35   :  { %66 = vsyncpa [#allocation12], 0 }
  0x36   :  { %67 = vsyncpa [#allocation7], 0 }
  0x37   :  { %69 = vsyncpa [#allocation7 + $0x1], 0  ;;  %s3170_s7 = smov 0   ;;  %s3172_s10 = smov 0  }
  0x38   :  { %s3174_s11 = smov 0   ;;  %s3176_s15 = smov 0  }
  0x39 LB: > { %s3509_s8 = sld [smem:[#allocation24_spill]]  ;;  %s3510_s5 = sld [smem:[#allocation19_spill]]  ;;  %s2961_s11 = sphi %s3174_s11, %s3555_s11   ;;  %s2957_s10 = sphi %s3172_s10, %s3557_s10   ;;  %s2953_s7 = sphi %s3170_s7, %s3556_s7   ;;  %s2965_s15 = sphi %s3176_s15, %s3553_s15  }
  0x3a   : > { %s3511_s9 = sld [smem:[#allocation20_spill]]  ;;  %3512 = sst [smem:[#allocation36_spill]] %s2953_s7 }
  0x3b   : > { %3513 = sst [smem:[#allocation37_spill]] %s2961_s11  ;;  %s3191_s0 = sadd.s32 4294967295, %s2965_s15  }
  0x3c   : > { %s2391_s16 = sadd.s32 4294967294, %s2965_s15   ;;  %s3195_s18 = sadd.s32 1, %s2965_s15  }
  0x3d   : > { %3514 = sst [smem:[#allocation38_spill]] %s3195_s18  ;;  %s696_s22 = sadd.s32 1, %s2961_s11 }
  0x3e   : > { %s693_s23 = ssub.s32 %s2965_s15, %s3195_s18  ;;  %p706_p0 = scmp.ne.s32.totalorder %s2961_s11, %s2957_s10 }
  0x3f   : > { %p694_p1 = scmp.eq.s32.totalorder %s693_s23, 0  ;;  %p707_p2 = scmp.eq.s32.totalorder %s3191_s0, 4 }
  0x40   : > { %p712_p3 = scmp.ne.s32.totalorder %s2957_s10, %s2953_s7  ;;  %p713_p4 = scmp.eq.s32.totalorder %s2391_s16, 4 }
  0x41   : > { %s3206_s26 = scalar_select %p694_p1, %s2961_s11, %s696_s22  }
  0x42   : > { %p3208_p5 = por %p707_p2, %p706_p0  ;;  %p3212_p6 = por %p713_p4, %p712_p3 }
  0x43   : > { %3515 = sst [smem:[#allocation39_spill]] %s3206_s26  ;;  %p2392_p7 = scmp.ge.s32.totalorder %s2965_s15, 1 }
  0x44   : > { %s3516_s28 = scalar_select %p3208_p5, 1, 0 }
  0x45   : > { %s3517_s1 = scalar_select %p3212_p6, 1, 0 }
  0x46   : > { %p720_p8 = scmp.lt.s32.totalorder %s2965_s15, 6  ;;  %p3483_p10 = scmp.eq.s32.totalorder %s3191_s0, 0 }
  0x47   : > { %3518 = sst [smem:[#allocation40_spill]] %s3517_s1  ;;  %s2996_s16 = smov [#allocation8]  }
  0x48   : > { %p3220_p11 = pnand %p2392_p7, %p720_p8  ;;  %s744_s22 = sshll.u32 %s2996_s16, 4  ;;  %s745_s22 = int_to_ptr.vmem [resolvable:$true] %s744_s22 }
  0x49   : > { %s2997_s23 = smov [#allocation11]   ;;  %s2998_s18 = smov [#allocation5]  }
  0x4a   : > { %s3519_s2 = scalar_select %p3220_p11, 1, 0 }
  0x4b   : > { %p2628_p12 = pneg %p3220_p11  ;;  %s766_s26 = sshll.u32 %s2997_s23, 4  ;;  %s3232_s26 = int_to_ptr.vmem [resolvable:$true] %s766_s26 }
  0x4c   : > { %s733_s1 = sshll.u32 %s2998_s18, 4  ;;  %s2751_s7 = scalar_lea.hbm %s3511_s9, 128  ;;  %s3234_s1 = int_to_ptr.vmem [resolvable:$true] %s733_s1 }
  0x4d   : > { %p3228_p13 = pnand %p3483_p10, %p2628_p12  ;;  %p2752_p0 = scmp.ne.s32.totalorder %s3511_s9, %s2751_s7 }
  0x4e   : > { %p2758_p4 = scmp.lt.u32.totalorder %s2751_s7, %s3511_s9 }
  0x4f   : > { %p3240_p1 = pneg %p3228_p13 }
  0x51   : > { %p2754_p2 = pnand %p3240_p1, %p2752_p0 }
  0x53   : > { %p2755_p3 = pneg %p2754_p2 }
  0x55   : > { %p2760_p7 = pnand %p2758_p4, %p2755_p3 }
  0x57   : > { %2763 = shalt.err (!%p2760_p7)
}
  0x58   : > { %s2764_s23 = scalar_lea.vmem %s745_s22, 128  ;;  %p2772_p10 = scmp.lt.s32.totalorder %s745_s22, %s745_s22 }
  0x59   : > { %p2765_p8 = scmp.ne.s32.totalorder %s745_s22, %s2764_s23  ;;  %p2773_p6 = scmp.lt.s32.totalorder %s2764_s23, %s2764_s23 }
  0x5b   : > { %p2767_p12 = pnand %p2765_p8, %p3240_p1  ;;  %p2774_p5 = por %p2773_p6, %p2772_p10 }
  0x5d   : > { %p2768_p9 = pneg %p2767_p12 }
  0x5f   : > { %p2775_p11 = pnand %p2774_p5, %p2768_p9 }
  0x61   : > { %2778 = shalt.err (!%p2775_p11)
}
  0x62   : > { %2634 = dma.hbm_to_vmem [thread:$0]  (!%p3228_p13), %s3511_s9, 128, %s745_s22, [#allocation9]  }
  0x63   : > { %s2779_s7 = scalar_lea.hbm %s3038_s17, 128 }
  0x64   : > { %p2780_p0 = scmp.ne.s32.totalorder %s3038_s17, %s2779_s7  ;;  %p2786_p4 = scmp.lt.u32.totalorder %s2779_s7, %s3038_s17 }
  0x66   : > { %p2782_p2 = pnand %p2780_p0, %p3240_p1 }
  0x68   : > { %p2783_p3 = pneg %p2782_p2 }
  0x6a   : > { %p2788_p7 = pnand %p2786_p4, %p2783_p3 }
  0x6c   : > { %2791 = shalt.err (!%p2788_p7)
}
  0x6d   : > { %s2792_s18 = scalar_lea.vmem %s3232_s26, 128  ;;  %p2800_p10 = scmp.lt.s32.totalorder %s3232_s26, %s3232_s26 }
  0x6e   : > { %p2793_p5 = scmp.ne.s32.totalorder %s3232_s26, %s2792_s18  ;;  %p2801_p11 = scmp.lt.s32.totalorder %s2792_s18, %s2792_s18 }
  0x70   : > { %p2795_p6 = pnand %p2793_p5, %p3240_p1  ;;  %p2802_p8 = por %p2801_p11, %p2800_p10 }
  0x72   : > { %p2796_p9 = pneg %p2795_p6 }
  0x74   : > { %p2803_p12 = pnand %p2802_p8, %p2796_p9 }
  0x76   : > { %2806 = shalt.err (!%p2803_p12)
}
  0x77   : > { %2640 = dma.hbm_to_vmem [thread:$0]  (!%p3228_p13), %s3038_s17, 128, %s3232_s26, [#allocation12]  }
  0x78   : > { %s2807_s22 = scalar_lea.hbm %s3510_s5, 128 }
  0x79   : > { %p2808_p0 = scmp.ne.s32.totalorder %s3510_s5, %s2807_s22  ;;  %p2814_p4 = scmp.lt.u32.totalorder %s2807_s22, %s3510_s5 }
  0x7b   : > { %p2810_p2 = pnand %p2808_p0, %p3240_p1 }
  0x7d   : > { %p2811_p3 = pneg %p2810_p2 }
  0x7f   : > { %p2816_p7 = pnand %p2814_p4, %p2811_p3 }
  0x81   : > { %2819 = shalt.err (!%p2816_p7)
}
  0x82   : > { %s2820_s23 = scalar_lea.vmem %s3234_s1, 128  ;;  %p2828_p10 = scmp.lt.s32.totalorder %s3234_s1, %s3234_s1 }
  0x83   : > { %p2821_p5 = scmp.ne.s32.totalorder %s3234_s1, %s2820_s23  ;;  %p2829_p11 = scmp.lt.s32.totalorder %s2820_s23, %s2820_s23 }
  0x85   : > { %p2823_p6 = pnand %p2821_p5, %p3240_p1  ;;  %p2830_p8 = por %p2829_p11, %p2828_p10 }
  0x87   : > { %p2824_p9 = pneg %p2823_p6 }
  0x89   : > { %p2831_p12 = pnand %p2830_p8, %p2824_p9 }
  0x8b   : > { %2834 = shalt.err (!%p2831_p12)
}
  0x8c   : > { %2631 = dma.hbm_to_vmem [thread:$0]  (!%p3228_p13), %s3510_s5, 128, %s3234_s1, [#allocation6]  }
  0x8d   : > { %s2999_s26 = smov [#allocation10]   ;;  %s3000_s18 = smov [#allocation13]  }
  0x8e   : > { %s755_s7 = sshll.u32 %s2999_s26, 4  ;;  %s786_s22 = sshll.u32 %s3000_s18, 4  ;;  %s756_s7 = int_to_ptr.vmem [resolvable:$true] %s755_s7  ;;  %s787_s22 = int_to_ptr.vmem [resolvable:$true] %s786_s22 }
  0x8f   : > { %s2835_s9 = scalar_lea.hbm %s3033_s13, 128 }
  0x90   : > { %p2836_p0 = scmp.ne.s32.totalorder %s3033_s13, %s2835_s9  ;;  %p2842_p4 = scmp.lt.u32.totalorder %s2835_s9, %s3033_s13 }
  0x92   : > { %p2838_p2 = pnand %p2836_p0, %p3240_p1 }
  0x94   : > { %p2839_p3 = pneg %p2838_p2 }
  0x96   : > { %p2844_p7 = pnand %p2842_p4, %p2839_p3 }
  0x98   : > { %2847 = shalt.err (!%p2844_p7)
}
  0x99   : > { %s2848_s23 = scalar_lea.vmem %s756_s7, 128  ;;  %p2856_p10 = scmp.lt.s32.totalorder %s756_s7, %s756_s7 }
  0x9a   : > { %p2849_p5 = scmp.ne.s32.totalorder %s756_s7, %s2848_s23  ;;  %p2857_p11 = scmp.lt.s32.totalorder %s2848_s23, %s2848_s23 }
  0x9c   : > { %p2851_p6 = pnand %p2849_p5, %p3240_p1  ;;  %p2858_p8 = por %p2857_p11, %p2856_p10 }
  0x9e   : > { %p2852_p9 = pneg %p2851_p6 }
  0xa0   : > { %p2859_p12 = pnand %p2858_p8, %p2852_p9 }
  0xa2   : > { %2862 = shalt.err (!%p2859_p12)
}
  0xa3   : > { %2637 = dma.hbm_to_vmem [thread:$0]  (!%p3228_p13), %s3033_s13, 128, %s756_s7, [#allocation9]  }
  0xa4   : > { %s2863_s9 = scalar_lea.hbm %s3509_s8, 16 }
  0xa5   : > { %p2864_p0 = scmp.ne.s32.totalorder %s3509_s8, %s2863_s9  ;;  %p2870_p4 = scmp.lt.u32.totalorder %s2863_s9, %s3509_s8 }
  0xa7   : > { %p2866_p2 = pnand %p2864_p0, %p3240_p1 }
  0xa9   : > { %p2867_p3 = pneg %p2866_p2 }
  0xab   : > { %p2872_p7 = pnand %p2870_p4, %p2867_p3 }
  0xad   : > { %2875 = shalt.err (!%p2872_p7)
}
  0xae   : > { %s2876_s1 = scalar_lea.vmem %s787_s22, 16  ;;  %s2883_s26 = scalar_lea.vmem %s787_s22, 32 }
  0xaf   : > { %p2877_p5 = scmp.ne.s32.totalorder %s787_s22, %s2876_s1  ;;  %p2884_p10 = scmp.lt.s32.totalorder %s787_s22, %s787_s22 }
  0xb0   : > { %p2885_p11 = scmp.lt.s32.totalorder %s2883_s26, %s2876_s1 }
  0xb1   : > { %p2879_p6 = pnand %p2877_p5, %p3240_p1 }
  0xb2   : > { %p2886_p8 = por %p2885_p11, %p2884_p10 }
  0xb3   : > { %p2880_p9 = pneg %p2879_p6 }
  0xb5   : > { %p2887_p12 = pnand %p2886_p8, %p2880_p9 }
  0xb7   : > { %2890 = shalt.err (!%p2887_p12)
}
  0xb8   : > { %2643 = dma.hbm_to_vmem [thread:$0]  (!%p3228_p13), %s3509_s8, 16, %s787_s22, [#allocation12]  }
  0xb9   : > { %p3522_p0 = scmp.ne.s32.totalorder %s3519_s2, 0 }
  0xba   : > { %p3523_p2 = scmp.eq.s32.totalorder (!%p3522_p0), %s3191_s0, 0 }
  0xbb   : > { %866 = sbr.rel (%p3522_p0) target bundleno = 2354 (0x932), region = 136 }
  0xc2   : > { %2936 = dma.done.wait (%p3523_p2), [#allocation6], 128   ;;  %p3524_p3 = pmov %p3523_p2 }
  0xc3   : > { %p3525_p1 = pmov %p3523_p2 }
  0xc4   : > { %2938 = vsyncadd (%p3524_p3), [#allocation6], 4294967168 }
  0xc5   : > { %2940 = dma.done.wait (%p3525_p1), [#allocation9], 256   ;;  %p3526_p4 = pmov %p3525_p1 }
  0xc6   : > { %p3527_p7 = pmov %p3525_p1 }
  0xc7   : > { %2942 = vsyncadd (%p3526_p4), [#allocation9], 4294967040 }
  0xc8   : > { %2944 = dma.done.wait (%p3527_p7), [#allocation12], 144   ;;  %p3528_p13 = pmov %p3525_p1 }
  0xc9   : > { %s3487_s11 = sand.u32 1, %s2957_s10   ;;  %p957_p5 = scmp.lt.s32.totalorder %s3191_s0, 4 }
  0xca   : > { %2946 = vsyncadd (%p3528_p13), [#allocation12], 4294967152  ;;  %s3320_s2 = sshll.u32 %s3487_s11, 3  ;;  %p3529_p6 = scmp.ne.s32.totalorder %s3191_s0, 0 }
  0xcb   : > { %s958_s16 = scalar_select %p957_p5, %s3191_s0, 4 }
  0xcc   : > { %964 = sbr.rel (%p3529_p6) target bundleno = 1074 (0x432), region = 160  ;;  %s3530_s3 = sld [smem:[#allocation23_spill]] (!%p3529_p6)  ;;  %v1049_v0 = vld [vmem:[%s3068_s14] sm:$0xff] (!%p3529_p6)  ;;  %v1050_v1 = vld [vmem:[%s3068_s14 + $0x8] sm:$0xf] (!%p3529_p6)  ;;  %vm1062_vm0 = vcmask (!%p3529_p6), 1043456  }
  0xcd   : > { %s2406_s7 = sshll.u32 %s958_s16, 3  ;;  %v3001_v2 = vmov (!%p3529_p6), 0.0|0.0   ;;  %v3002_v3 = vmov (!%p3529_p6), 0.0   ;;  %v2579_v4 = vpack.c.bf16 (!%p3529_p6), %v1050_v1, %v1049_v0  ;;  %v965_v6 = vld [vmem:[#allocation5] sm:$0xff] (!%p3529_p6)  ;;  %vm974_vm1 = vcmask (!%p3529_p6), 64512   ;;  %s3531_s6 = sld [smem:[#allocation25_spill]] (!%p3529_p6) }
  0xce   : > { %s3324_s18 = scalar_lea.vmem %s3048_s25, %s2406_s7  ;;  %2578 = vmatprep.subr.bf16.mxu1 (!%p3529_p6), %v3001_v2  ;;  %2483 = vmatprep.subr.mxu0 (!%p3529_p6), %v3002_v3  ;;  %vm3003_vm2 = vmmov (!%p3529_p6), 1   ;;  %vm3004_vm4 = vmmov (!%p3529_p6), 0   ;;  %v1137_v7 = vld [vmem:[%s3078_s24] sm:$0x3f] (!%p3529_p6)  ;;  %vm1149_vm5 = vcmask (!%p3529_p6), 1045504   ;;  %vm1058_vm6 = vcmask (!%p3529_p6), 97280  }
  0xcf   : > { %vm2580_vm3 = vmpackc.low (!%p3529_p6), %vm1062_vm0, %vm3003_vm2  ;;  %2485 = vmatprep.mubr.msk.f32.mxu0 (!%p3529_p6), %vm3004_vm4, %v3002_v3  ;;  %v1048_v8 = vld [vmem:[#allocation8] sm:$0xff] (!%p3529_p6)  ;;  %2492 = vmatprep.mubr.msk.f32.mxu1 (!%p3529_p6), %vm3004_vm4, %v3002_v3  ;;  %v1136_v9 = vld [vmem:[#allocation10] sm:$0xff] (!%p3529_p6)  ;;  %vm1145_vm7 = vcmask (!%p3529_p6), 48128   ;;  %s3532_s23 = sld [smem:[#allocation27_spill]] (!%p3529_p6)  ;;  %s3533_s9 = sld [smem:[#allocation26_spill]] (!%p3529_p6)  ;;  %vm1373_vm8 = vcmask (!%p3529_p6), 130048  }
  0xd0   : > { %2581 = vmatpush3.bf16.msk.msra.mxu1 (!%p3529_p6), %vm2580_vm3, %v2579_v4  ;;  %v1224_v11 = vld [vmem:[%s3093_s12] sm:$0xff] (!%p3529_p6)  ;;  %v2408_v12 = vld [vmem:[#allocation13] ss:$0 sm:$0xff] (!%p3529_p6)  ;;  %v1372_v15 = vld [vmem:[%s3098_s20 + $0x8] sm:$0xff] (!%p3529_p6)  ;;  %s3534_s1 = sld [smem:[#allocation29_spill]] (!%p3529_p6)  ;;  %s3535_s26 = sld [smem:[#allocation28_spill]] (!%p3529_p6) }
  0xd1   : > { %2500 = vmatprep.subr.mxu1 (!%p3529_p6), %v3002_v3  ;;  %v1371_v14 = vld [vmem:[%s3098_s20] sm:$0xff] (!%p3529_p6)  ;;  %s3536_s16 = sld [smem:[#allocation30_spill]] (!%p3529_p6)  ;;  %v1456_v42 = vld [vmem:[#allocation11] sm:$0xff] (!%p3529_p6) }
  0xd2   : > { %v966_v5 = vld [vmem:[%s3530_s3] sm:$0xff] (!%p3529_p6)  ;;  %v2583_v21 = vpack.c.bf16 (!%p3529_p6), %v1372_v15, %v1371_v14 }
  0xd3   : > { %2484 = vmatpush3.msra.mxu0 %v966_v5  ;;  %2493 = vmatmul.mubr.msk.f32.vlgmr.msra.gmra.mrb[0].mxu1 %vm1058_vm6, %v1048_v8  ;;  %v1223_v10 = vld [vmem:[%s3531_s6] sm:$0xff] }
  0xd4   : > { %2486 = vmatmul.mubr.msk.f32.vlgmr.msra.gmra.mrb[0].mxu0 %vm974_vm1, %v965_v6  ;;  %2495 = vmatprep.subr.mxu0 %v3002_v3  ;;  %v2410_v18 = vld [vmem:[%s3073_s19] ss:$0 sm:$0xff] }
  0xd5   : > { %2496 = vmatpush3.msk.msra.mxu0 %vm1149_vm5, %v1137_v7  ;;  %2497 = vmatprep.mubr.msk.f32.mxu0 %vm3004_vm4, %v3002_v3  ;;  %v2413_v20 = vld [vmem:[%s3083_s30] ss:$0 sm:$0xff]  ;;  %v1532_v28 = vld [vmem:[%s3532_s23 + $0x8] sm:$0xff] }
  0xd6   : > { %2505 = vmatprep.subr.mxu0 %v3002_v3  ;;  %2502 = vmatprep.mubr.msk.f32.mxu1 %vm3004_vm4, %v3002_v3  ;;  %v1531_v27 = vld [vmem:[%s3532_s23] sm:$0xff]  ;;  %v1615_v38 = vld [vmem:[%s3534_s1 + $0x8] sm:$0xff] }
  0xd7   : > { %2501 = vmatpush3.msra.mxu1 %v1224_v11  ;;  %v2586_v29 = vpack.c.bf16 %v1532_v28, %v1531_v27  ;;  %v2419_v36 = vld [vmem:[%s3533_s9] ss:$0 sm:$0xff] }
  0xd8   : > { %2498 = vmatmul.mubr.msk.f32.vlgmr.msra.gmra.mrb[2].mxu0 %vm1145_vm7, %v1136_v9  ;;  %2582 = vmatprep.subr.bf16.mxu1 %v3001_v2  ;;  %v1614_v37 = vld [vmem:[%s3534_s1] sm:$0xff] }
  0xd9   : > { %2507 = vmatprep.mubr.msk.f32.mxu0 %vm3004_vm4, %v3002_v3  ;;  %2506 = vmatpush3.msra.mxu0 %v1223_v10  ;;  %v2589_v43 = vpack.c.bf16 %v1615_v38, %v1614_v37  ;;  %v2421_v46 = vld [vmem:[%s3535_s26] ss:$0 sm:$0xff] }
  0xda   : > { %2517 = vmatprep.subr.mxu0 %v3002_v3  ;;  %v2423_v47 = vld [vmem:[%s3536_s16] ss:$0 sm:$0xff] }
 0x1a6   : > { %v1132_v19 = vpop.f32.mrb[0].mxu1 }
 0x1a7   : > { %v1044_v13 = vpop.f32.mrb[0].mxu0  ;;  %v1133_v22 = vadd.f32 %v2410_v18, %v1132_v19  ;;  %v2494_v23 = vpop.f32.mrb[1].mxu1 }
 0x1a8   : > { %v1045_v16 = vadd.f32 %v2408_v12, %v1044_v13  ;;  %v2487_v17 = vpop.f32.mrb[1].mxu0 }
 0x1a9   : > { %2503 = vmatmul.mubr.msk.f32.vlgmr.msra.gmra.mrb[2].mxu1 %vm974_vm1, %v1133_v22 }
 0x1aa   : > { %2508 = vmatmul.mubr.msk.f32.vlgmr.msra.gmra.mrb[4].mxu0 %vm974_vm1, %v1045_v16  ;;  %2584 = vmatpush3.bf16.msra.mxu1 %v2583_v21 }
 0x1ab   : > { %v1219_v24 = vpop.f32.mrb[2].mxu0  ;;  %2519 = vmatprep.mubr.msk.f32.mxu0 %vm3004_vm4, %v3002_v3  ;;  %2514 = vmatprep.mubr.msk.f32.mxu1 %vm3004_vm4, %v3002_v3 }
 0x1ac   : > { %v2499_v25 = vpop.f32.mrb[3].mxu0  ;;  %v1220_v26 = vadd.f32 %v2413_v20, %v1219_v24  ;;  %2585 = vmatprep.subr.bf16.mxu1 %v3001_v2 }
 0x1ae   : > { %2515 = vmatmul.mubr.msk.f32.vlgmr.msra.gmra.mrb[4].mxu1 %vm1373_vm8, %v1220_v26 }
 0x1af   : > { %2526 = vmatprep.mubr.msk.f32.mxu1 %vm3004_vm4, %v3002_v3  ;;  %2587 = vmatpush3.bf16.msra.mxu1 %v2586_v29 }
 0x27c   : > { %v1294_v32 = vpop.f32.mrb[2].mxu1 }
 0x27d   : > { %v1367_v30 = vpop.f32.mrb[4].mxu0  ;;  %v2504_v34 = vpop.f32.mrb[3].mxu1 }
 0x27e   : > { %v2509_v31 = vpop.f32.mrb[5].mxu0  ;;  %v1368_v33 = vadd.f32 %v1367_v30, %v1294_v32 }
 0x281   : > { %v1443_v35 = vpop.f32.mrb[4].mxu1 }
 0x282   : > { %v1447_v39 = vadd.f32 %v1443_v35, %v1368_v33  ;;  %v2516_v40 = vpop.f32.mrb[5].mxu1 }
 0x284   : > { %v1455_v41 = vadd.f32 %v2419_v36, %v1447_v39 }
 0x286   : > { %2518 = vmatpush3.msra.mxu0 %v1455_v41 }
 0x287   : > { %2520 = vmatmul.mubr.msk.f32.vlgmr.msra.gmra.mrb[6].mxu0 %vm974_vm1, %v1456_v42  ;;  %2588 = vmatprep.subr.bf16.mxu0 %v3001_v2 }
 0x288   : > { %2590 = vmatpush3.bf16.msra.mxu0 %v2589_v43  ;;  %2533 = vmatprep.mubr.msk.f32.mxu0 %vm3004_vm4, %v3002_v3 }
 0x35a   : > { %v1526_v44 = vpop.f32.mrb[6].mxu0 }
 0x35b   : > { %1530 = vst.msk [vmem:[#allocation2] sm:$0xff] %vm1373_vm8, %v1526_v44  ;;  %v2521_v45 = vpop.f32.mrb[7].mxu0  ;;  %2527 = vmatmul.mubr.msk.f32.vlgmr.msra.gmra.mrb[6].mxu1 %vm1373_vm8, %v1526_v44  ;;  %2534 = vmatmul.mubr.msk.f32.vlgmr.msra.gmra.mrb[8].mxu0 %vm1373_vm8, %v1526_v44 }
 0x42e   : > { %v1609_v48 = vpop.f32.mrb[6].mxu1  ;;  %v1689_v49 = vpop.f32.mrb[8].mxu0 }
 0x42f   : > { %v1610_v50 = vadd.f32 %v2421_v46, %v1609_v48  ;;  %v1690_v51 = vadd.f32 %v2423_v47, %v1689_v49  ;;  %v2528_v52 = vpop.f32.mrb[7].mxu1  ;;  %v2535_v53 = vpop.f32.mrb[9].mxu0 }
 0x431   : > { %1613 = vst.msk [vmem:[#allocation3] sm:$0xff] %vm1373_vm8, %v1610_v50  ;;  %1693 = vst.msk [vmem:[#allocation4] sm:$0xff] %vm1373_vm8, %v1690_v51 }
 0x432 PF: > { %s3537_s7 = sld [smem:[#allocation31_spill]]  ;;  %s3539_s11 = sld [smem:[#allocation22_spill]]  ;;  %v1787_v54 = vld [vmem:[%s3324_s18] sm:$0xff]  ;;  %v3005_v57 = vmov 0   ;;  %v3006_v58 = vmov 0.0|0.0   ;;  %vm3007_vm9 = vmmov 0   ;;  %v1788_v5 = vlaneseq }
 0x433   : > { %2738 = vset.pattern.permute.xlu0 %v3005_v57  ;;  %2591 = vmatprep.subr.bf16.mxu0 %v3006_v58  ;;  %v3008_v62 = vmov 0.0   ;;  %s3541_s26 = sld [smem:[#allocation34_spill]]  ;;  %vm1706_vm10 = vcmask 130048   ;;  %vm1803_vm11 = vcmask 1043456   ;;  %s3543_s18 = sld [smem:[#allocation32_spill]]  ;;  %vm1799_vm12 = vcmask 162816  }
 0x434   : > { %1791 = vperm.xlu0 %2738, %v1787_v54   ;;  %2540 = vmatprep.mubr.msk.f32.mxu0 %vm3007_vm9, %v3008_v62  ;;  %v1789_v6 = vand.u32 127, %v1788_v5  ;;  %s3544_s16 = sld [smem:[#allocation35_spill]]  ;;  %v1694_v20 = vld [vmem:[#allocation2] sm:$0xff]  ;;  %vm1953_vm14 = vcmask 64512   ;;  %v2228_v48 = vstv %s3191_s0  ;;  %v2147_v52 = vld [vmem:[%s3158_s29 + $0x8] sm:$0xff]  ;;  %s3546_s1 = scalar_lea.vmem [#allocation14], %s3320_s2 }
 0x435   : > { %2594 = vmatprep.subr.bf16.mxu1 %v3006_v58  ;;  %2549 = vmatprep.mubr.msk.f32.mxu1 %vm3007_vm9, %v3008_v62  ;;  %v2434_v33 = vld [vmem:[%s3153_s21] ss:$0 sm:$0xff]  ;;  %s2253_s3 = sshll.u32 %s3546_s1, 4  ;;  %s3548_s5 = sand.u32 1, %s2957_s10   ;;  %s3431_s3 = int_to_ptr.vmem [resolvable:$true] %s2253_s3 }
 0x436   : > { %v2146_v51 = vld [vmem:[%s3158_s29] sm:$0xff]  ;;  %s2240_s6 = scalar_lea.sflag [#allocation7], %s3548_s5  ;;  %s2891_s8 = scalar_lea.vmem %s3431_s3, 128 }
 0x437   : > { %v2604_v53 = vpack.c.bf16 %v2147_v52, %v2146_v51  ;;  %p2892_p9 = scmp.ne.s32.totalorder %s3431_s3, %s2891_s8  ;;  %p3549_p10 = scmp.ne.s32.totalorder %s3516_s28, 0 }
 0x438   : > { %s3538_s9 = smov %s3537_s7  ;;  %s3540_s22 = smov %s3539_s11  ;;  %v1697_v55 = vld [vmem:[%s3537_s7] sm:$0xff]  ;;  %v1695_v0 = vld [vmem:[#allocation3] sm:$0xff]  ;;  %v1696_v11 = vld [vmem:[#allocation4] sm:$0xff] }
 0x439   : > { %v1698_v56 = vld [vmem:[%s3538_s9 + $0x8] sm:$0xff]  ;;  %v1796_v60 = vld [vmem:[%s3539_s11] sm:$0xff]  ;;  %v1798_v1 = vld [vmem:[%s3540_s22 + $0x10] sm:$0xf]  ;;  %s3542_s11 = sld [smem:[#allocation33_spill]]  ;;  %s3009_s7 = smov 16  }
 0x43a   : > { %v2592_v59 = vpack.c.bf16 %v1698_v56, %v1697_v55  ;;  %v1797_v61 = vld [vmem:[%s3540_s22 + $0x8] sm:$0xff]  ;;  %v1878_v2 = vld [vmem:[%s3541_s26] sm:$0xff]  ;;  %2116 = vrot.lane.b32.xlu1 %v1696_v11, %s3009_s7  ;;  %p2893_p11 = pnand %p2892_p9, %p3549_p10 }
 0x43b   : > { %v2595_v63 = vpack.c.bf16 %v1797_v61, %v1796_v60  ;;  %v1879_v3 = vld [vmem:[%s3541_s26 + $0x8] sm:$0xff]  ;;  %v2425_v10 = vld [vmem:[%s3543_s18] ss:$0 sm:$0xff]  ;;  %s3545_s18 = sld [smem:[#allocation21_spill]] }
 0x43c   : > { %2593 = vmatpush3.bf16.msra.mxu0 %v2592_v59  ;;  %v2598_v4 = vpack.c.bf16 %v1879_v3, %v1878_v2  ;;  %v2027_v18 = vld [vmem:[%s3544_s16] sm:$0xff]  ;;  %v2028_v19 = vld [vmem:[%s3544_s16 + $0x8] sm:$0xff]  ;;  %p2894_p8 = pneg %p2893_p11 }
 0x43d   : > { %2596 = vmatpush3.bf16.msra.mxu1 %v2595_v63  ;;  %2597 = vmatprep.subr.bf16.mxu0 %v3006_v58  ;;  %v2601_v22 = vpack.c.bf16 %v2028_v19, %v2027_v18 }
 0x43e   : > { %2547 = vmatprep.subr.mxu1 %v3008_v62 }
 0x43f   : > { %2541 = vmatmul.mubr.msk.f32.vlgmr.msra.gmra.mrb[0].mxu0 %vm1706_vm10, %v1695_v0  ;;  %v1877_v8 = vld [vmem:[%s3542_s11] sm:$0xff]  ;;  %s3010_s11 = smov 96  }
 0x440   : > { %2556 = vmatprep.mubr.msk.f32.mxu0 %vm3007_vm9, %v3008_v62  ;;  %2599 = vmatpush3.bf16.msra.mxu0 %v2598_v4 }
 0x441   : > { %2548 = vmatpush3.msk.msra.mxu1 %vm1803_vm11, %v1798_v1  ;;  %2600 = vmatprep.subr.bf16.mxu0 %v3006_v58  ;;  %v2227_v47 = vld [vmem:[%s3545_s18] sm:$0xff]  ;;  %s3013_s18 = smov 112  }
 0x442   : > { %2559 = vmatprep.subr.mxu1 %v3008_v62  ;;  %vm2229_vm15 = vcmp.gt.s32.totalorder %v2227_v47, %v2228_v48 }
 0x443   : > { %v2438_v50 = vsel %vm2229_vm15, 1.0, %v3008_v62 }
 0x4ac   : > { %v2117_v43 = vpop.permute.xlu1 %2116 }
 0x4b3   : > { %v1792_v7 = vpop.permute.xlu0 %1791 }
 0x4b4   : > { %vm1793_vm13 = vcmp.eq.s32.totalorder %v1792_v7, %v1789_v6 }
 0x4b5   : > { %v2428_v9 = vsel %vm1793_vm13, 1.0, %v3008_v62 }
 0x4b6   : > { %2550 = vmatmul.mubr.msk.f32.vlgmr.msra.gmra.mrb[0].mxu1 %vm1799_vm12, %v2428_v9 }
 0x4b7   : > { %2560 = vmatpush3.msra.mxu1 %v1877_v8  ;;  %2561 = vmatprep.mubr.msk.f32.mxu1 %vm3007_vm9, %v3008_v62 }
 0x4b8   : > { %2603 = vmatprep.subr.bf16.mxu1 %v3006_v58  ;;  %v2436_v58 = vld [vmem:[%s3163_s27] ss:$0 sm:$0xff] }
 0x512   : > { %v1776_v12 = vpop.f32.mrb[0].mxu0 }
 0x513   : > { %v1777_v13 = vadd.f32 %v2425_v10, %v1776_v12  ;;  %v2542_v14 = vpop.f32.mrb[1].mxu0 }
 0x515   : > { %v2427_v15 = vmul.f32 -1.442695, %v1777_v13 }
 0x517   : > { %2739 = vpow2.f32 %v2427_v15 }
 0x521   : > { %v2740_v16 = vpop.eup %2739 }
 0x522   : > { %v1783_v17 = vadd.f32 1.0, %v2740_v16 }
 0x524   : > { %2741 = vrcp.f32 %v1783_v17 }
 0x52e   : > { %v2742_v21 = vpop.eup %2741 }
 0x52f   : > { %v1786_v23 = vmul.f32 %v2742_v21, %v1694_v20 }
 0x531   : > { %2557 = vmatmul.mubr.msk.f32.vlgmr.msra.gmra.mrb[2].mxu0 %vm1706_vm10, %v1786_v23 }
 0x532   : > { %2602 = vmatpush3.bf16.msra.mxu0 %v2601_v22  ;;  %2568 = vmatprep.mubr.msk.f32.mxu0 %vm3007_vm9, %v3008_v62 }
 0x535   : > { %2569 = vmatmul.mubr.msk.f32.vlgmr.msra.gmra.mrb[4].mxu0 %vm1706_vm10, %v1695_v0 }
 0x589   : > { %v1873_v24 = vpop.f32.mrb[0].mxu1 }
 0x58a   : > { %v2551_v25 = vpop.f32.mrb[1].mxu1  ;;  %2562 = vmatmul.mubr.msk.f32.vlgmr.msra.gmra.mrb[2].mxu1 %vm1953_vm14, %v1873_v24 }
 0x58b   : > { %2575 = vmatprep.mubr.msk.f32.mxu1 %vm3007_vm9, %v3008_v62  ;;  %2605 = vmatpush3.bf16.msra.mxu1 %v2604_v53 }
 0x604   : > { %v1949_v26 = vpop.f32.mrb[2].mxu0 }
 0x605   : > { %v2558_v27 = vpop.f32.mrb[3].mxu0 }
 0x608   : > { %v2095_v28 = vpop.f32.mrb[4].mxu0 }
 0x609   : > { %v2570_v29 = vpop.f32.mrb[5].mxu0 }
 0x65d   : > { %v2023_v30 = vpop.f32.mrb[2].mxu1 }
 0x65e   : > { %v2024_v31 = vadd.f32 %v2023_v30, %v1949_v26  ;;  %v2563_v32 = vpop.f32.mrb[3].mxu1 }
 0x660   : > { %v2099_v34 = vadd.f32 %v2095_v28, %v2024_v31 }
 0x662   : > { %v2107_v35 = vadd.f32 %v2434_v33, %v2099_v34 }
 0x664   : > { %2743 = vtanh.f32 %v2107_v35  ;;  %v2435_v37 = vmul.f32 -1.442695, %v2107_v35 }
 0x666   : > { %2745 = vpow2.f32 %v2435_v37 }
 0x66e   : > { %v2744_v36 = vpop.eup %2743 }
 0x66f   : > { %2121 = vrot.lane.b32.xlu0 %v2744_v36, %s3010_s11  ;;  %s3011_s11 = smov 32  }
 0x670   : > { %v2746_v38 = vpop.eup %2745 }
 0x671   : > { %v2111_v39 = vadd.f32 1.0, %v2746_v38 }
 0x673   : > { %2747 = vrcp.f32 %v2111_v39 }
 0x67d   : > { %v2748_v40 = vpop.eup %2747 }
 0x67e   : > { %v2119_v44 = vmul.f32 %v2748_v40, %v2117_v43 }
 0x6e1   : > { %v2122_v41 = vpop.permute.xlu0 %2121 }
 0x6e2   : > { %v2124_v42 = vmul.f32 %v2748_v40, %v2122_v41 }
 0x6e4   : > { %2126 = vrot.lane.b32.xlu1 %v2124_v42, %s3009_s7  ;;  %s3012_s7 = smov 80  }
 0x756   : > { %v2127_v45 = vpop.permute.xlu1 %2126 }
 0x757   : > { %v2129_v46 = vadd.f32 %v2127_v45, %v2119_v44 }
 0x759   : > { %2749 = vtanh.f32 %v2129_v46 }
 0x763   : > { %v2750_v49 = vpop.eup %2749 }
 0x764   : > { %2132 = vrot.lane.b32.xlu0 %v2750_v49, %s3011_s11  ;;  %s2440_s11 = sshll.u32 %s3191_s0, 7  ;;  %s3014_s0 = smov [#allocation14]  }
 0x768   : > { %2234 = vperm.xlu0 %2738, %v2438_v50  }
 0x7d6   : > { %v2133_v54 = vpop.permute.xlu0 %2132 }
 0x7d7   : > { %v2135_v55 = vmul.f32 %v2748_v40, %v2133_v54 }
 0x7d9   : > { %2137 = vrot.lane.b32.xlu1 %v2135_v55, %s3012_s7  ;;  %s3429_s7 = scalar_lea.hbm %s3168_s4, %s2440_s11 }
 0x7dd   : > { %2142 = vrot.lane.b32.xlu1 %v2129_v46, %s3013_s18  ;;  %s3547_s18 = smov %s3546_s1  ;;  %s2895_s1 = sshll.u32 %s3014_s0, 4  ;;  %s2896_s1 = int_to_ptr.vmem [resolvable:$false] %s2895_s1 }
 0x7de   : > { %s2897_s9 = scalar_lea.vmem %s2896_s1, 256  ;;  %p2898_p12 = scmp.lt.s32.totalorder %s3431_s3, %s2896_s1 }
 0x7df   : > { %p2899_p0 = scmp.lt.s32.totalorder %s2897_s9, %s2891_s8 }
 0x7e1   : > { %p2900_p2 = por %p2899_p0, %p2898_p12 }
 0x7e3   : > { %p2901_p3 = pnand %p2900_p2, %p2894_p8 }
 0x7e7   : > { %v2235_v62 = vpop.permute.xlu0 %2234 }
 0x84b   : > { %v2138_v56 = vpop.permute.xlu1 %2137 }
 0x84c   : > { %2140 = vst.msk [vmem:[#allocation3] sm:$0xff] %vm1706_vm10, %v2138_v56  ;;  %2576 = vmatmul.mubr.msk.f32.vlgmr.msra.gmra.mrb[4].mxu1 %vm1706_vm10, %v2138_v56 }
 0x84f   : > { %v2143_v57 = vpop.permute.xlu1 %2142 }
 0x850   : > { %2145 = vst.msk [vmem:[#allocation4] sm:$0xff] %vm1706_vm10, %v2143_v57 }
 0x91f   : > { %v2223_v59 = vpop.f32.mrb[4].mxu1 }
 0x920   : > { %v2224_v60 = vadd.f32 %v2436_v58, %v2223_v59  ;;  %v2577_v61 = vpop.f32.mrb[5].mxu1 }
 0x922   : > { %v2237_v63 = vmul.f32 %v2235_v62, %v2224_v60 }
 0x924   : > { %2238 = vst [vmem:[%s3547_s18] sm:$0xff] %v2237_v63 }
 0x925   : > { %2904 = shalt.err (!%p2901_p3)
}
 0x926   : > { %s2905_s5 = scalar_lea.hbm %s3429_s7, 128  ;;  %s2909_s2 = scalar_lea.hbm %s3168_s4, 640 }
 0x927   : > { %p2906_p1 = scmp.ne.s32.totalorder %s3429_s7, %s2905_s5  ;;  %p2910_p13 = scmp.lt.u32.totalorder %s3429_s7, %s3168_s4 }
 0x928   : > { %p2911_p5 = scmp.lt.u32.totalorder %s2909_s2, %s2905_s5  ;;  %p2913_p9 = scmp.lt.u32.totalorder %s2905_s5, %s3429_s7 }
 0x929   : > { %p2907_p4 = pnand %p2906_p1, %p3549_p10 }
 0x92a   : > { %p2912_p6 = por %p2911_p5, %p2910_p13 }
 0x92b   : > { %p2908_p7 = pneg %p2907_p4 }
 0x92c   : > { %p2914_p11 = por %p2913_p9, %p2912_p6 }
 0x92e   : > { %p2915_p8 = pnand %p2914_p11, %p2908_p7 }
 0x930   : > { %2918 = shalt.err (!%p2915_p8)
}
 0x931   : > { %2626 = dma.vmem_to_hbm [thread:$0]  (%p3549_p10), %s3431_s3, 128, %s3429_s7, %s2240_s6  }
 0x932 PF: > { %s3550_s8 = sld [smem:[#allocation36_spill]]  ;;  %s3551_s9 = sld [smem:[#allocation40_spill]] }
 0x933   : > { %p2658_p12 = scmp.ge.s32.totalorder %s2965_s15, 2 }
 0x938   : > { %s2265_s11 = sand.u32 1, %s3550_s8   ;;  %p3552_p0 = scmp.ne.s32.totalorder %s3551_s9, 0 }
 0x939   : > { %s2266_s18 = scalar_lea.sflag [#allocation7], %s2265_s11 }
 0x93a   : > { %p2645_p2 = pnand %p2658_p12, %p3552_p0 }
 0x93c   : > { %2948 = dma.done.wait (!%p2645_p2), %s2266_s18, 128  }
 0x93d   : > { %2950 = vsyncadd (!%p2645_p2), %s2266_s18, 4294967168  ;;  %s3553_s15 = sld [smem:[#allocation38_spill]]  ;;  %s3554_s0 = sld [smem:[#allocation37_spill]] }
 0x93e   : > { %s3555_s11 = sld [smem:[#allocation39_spill]]  ;;  %s3556_s7 = smov %s2957_s10 }
 0x943   : > { %p72_p3 = scmp.ge.s32.totalorder %s3553_s15, 7   ;;  %s3557_s10 = smov %s3554_s0 }
 0x945   :  { %74 = sbr.rel (!%p72_p3) target bundleno = 57 (0x39), region = 225 }
 0x94c   :  { %2271 = vsyncpa [#allocation6], 1 }
 0x94d   :  { %2273 = vsyncpa [#allocation6 + $0x1], 1 }
 0x94e   :  { %2274 = vsyncpa [#allocation9], 1 }
 0x94f   :  { %2275 = vsyncpa [#allocation12], 1 }
 0x950   :  { %2276 = vsyncpa [#allocation7], 1 }
 0x951   :  { %2278 = vsyncpa [#allocation7 + $0x1], 1 }

</bundles_post_ra>
